<compile_context>
chip_gen: v5e
topology: v5e:2x2
jax: 0.10.0
libtpu: 0.0.40
codegen_flags: <defaults>
</compile_context>

<pallas_src>
import functools

import jax
import jax.numpy as jnp
from jax.experimental import pallas as pl
from jax.experimental.pallas import tpu as pltpu

_LANES = 128
_TARGET_BYTES = 2 * 1024 * 1024    # per input per grid step
_INV_LN10 = 0.4342944819032518


def _sisdr_kernel(len_ref, ref_ref, est_ref, o_ref,
                  sr_acc, se_acc, srr_acc, see_acc, sre_acc,
                  *, scaling: bool, zero_mean: bool, chunk: int):
    r_idx = pl.program_id(1)
    num_r = pl.num_programs(1)
    true_len = len_ref[0]

    @pl.when(r_idx == 0)
    def _init():
        sr_acc[...] = jnp.zeros_like(sr_acc)
        se_acc[...] = jnp.zeros_like(se_acc)
        srr_acc[...] = jnp.zeros_like(srr_acc)
        see_acc[...] = jnp.zeros_like(see_acc)
        sre_acc[...] = jnp.zeros_like(sre_acc)

    def _accumulate(r, e):
        # Single pass over the chunk: raw moments per batch row.
        sr_acc[...] += jnp.sum(r, axis=-1, keepdims=True)
        se_acc[...] += jnp.sum(e, axis=-1, keepdims=True)
        srr_acc[...] += jnp.sum(r * r, axis=-1, keepdims=True)
        see_acc[...] += jnp.sum(e * e, axis=-1, keepdims=True)
        sre_acc[...] += jnp.sum(r * e, axis=-1, keepdims=True)

    chunk_end = (r_idx + 1) * chunk
    is_full = chunk_end <= true_len

    @pl.when(is_full)
    def _full_chunk():
        _accumulate(ref_ref[...].astype(jnp.float32),
                    est_ref[...].astype(jnp.float32))

    @pl.when(jnp.logical_not(is_full))
    def _tail_chunk():
        # Last (ragged) chunk: lanes past the true length hold unspecified
        # values (no HBM padding copy was made) — zero them before use.
        n_valid = true_len - r_idx * chunk
        pos = jax.lax.broadcasted_iota(jnp.int32, ref_ref.shape, 1)
        mask = pos < n_valid
        r = jnp.where(mask, ref_ref[...].astype(jnp.float32), 0.0)
        e = jnp.where(mask, est_ref[...].astype(jnp.float32), 0.0)
        _accumulate(r, e)

    @pl.when(r_idx == num_r - 1)
    def _finalize():
        eps = jnp.float32(1e-8)
        L = true_len.astype(jnp.float32)
        S_r, S_e = sr_acc[...], se_acc[...]
        S_rr, S_ee, S_re = srr_acc[...], see_acc[...], sre_acc[...]

        if zero_mean:
            mu_r = S_r / L
            mu_e = S_e / L
        else:
            mu_r = jnp.zeros_like(S_r)
            mu_e = jnp.zeros_like(S_e)

        # Centered sums over the true (unpadded) length. These are >= 0 by
        # construction in the two-pass reference; clamp to guard f32
        # cancellation.
        sum_rr = jnp.maximum(S_rr - L * mu_r * mu_r, 0.0)
        sum_ee = jnp.maximum(S_ee - L * mu_e * mu_e, 0.0)
        sum_re = S_re - L * mu_r * mu_e

        if scaling:
            scale = (sum_re + eps) / (sum_rr + eps)
        else:
            scale = jnp.ones_like(sum_rr)

        signal = scale * scale * sum_rr
        noise = sum_ee - 2.0 * scale * sum_re + scale * scale * sum_rr
        # Guard catastrophic cancellation for high-SNR estimates: keep noise
        # strictly positive so ratio stays finite / non-NaN.
        noise = jnp.maximum(noise, jnp.float32(1e-30))
        ratio = signal / noise + eps
        sdr = jnp.float32(-10.0) * jnp.log(ratio) * jnp.float32(_INV_LN10)
        o_ref[...] = sdr.astype(o_ref.dtype)


def _round_up(x, m):
    return ((x + m - 1) // m) * m


def _choose_batch_block(nb, sub, desired):
    """Largest legal batch block <= desired.

    Legal values: nb itself (block dim == full array dim) or a multiple of
    `sub` (dtype sublane packing) that divides nb.
    """
    if nb <= sub or nb % sub != 0:
        return nb
    if desired >= nb:
        return nb
    best = sub
    b = sub
    while b <= min(desired, nb):
        if nb % b == 0:
            best = b
        b += sub
    return best


def sisdr_loss(
    x: jnp.ndarray,
    y: jnp.ndarray,
    *,
    scaling: bool = True,
    reduction: str = "mean",
    zero_mean: bool = True,
    clip_min=None,
    weight: float = 1.0,
):
    """x = references, y = estimates; shapes (B, C, T) or (B, T)."""
    del weight  # stored on the module, unused in the forward pass
    nb = x.shape[0]
    refs = x.reshape(nb, -1)
    ests = y.reshape(nb, -1)
    L = refs.shape[-1]

    itemsize = jnp.dtype(refs.dtype).itemsize
    sub = {4: 8, 2: 16, 1: 32}.get(itemsize, 8)

    # ---- Tiling: batch block bb + balanced length chunks (~2 MiB / input). ----
    bytes_per_item = max(_round_up(L, _LANES) * itemsize, 1)
    desired_bb = max(1, _TARGET_BYTES // bytes_per_item)
    bb = _choose_batch_block(nb, sub, desired_bb)
    num_b = nb // bb

    target_elems = _TARGET_BYTES // itemsize
    max_chunk = max(_LANES, (target_elems // bb) // _LANES * _LANES)
    num_r = -(-L // max_chunk)                       # balanced chunk count
    chunk = _round_up(-(-L // num_r), _LANES)        # lane-aligned chunk size

    lengths = jnp.array([L], dtype=jnp.int32)        # scalar-prefetch true length

    kernel = functools.partial(
        _sisdr_kernel, scaling=scaling, zero_mean=zero_mean, chunk=chunk
    )

    per_item = pl.pallas_call(
        kernel,
        out_shape=jax.ShapeDtypeStruct((nb, 1), jnp.float32),
        grid_spec=pltpu.PrefetchScalarGridSpec(
            num_scalar_prefetch=1,
            grid=(num_b, num_r),
            in_specs=[
                pl.BlockSpec((bb, chunk), lambda b, r, tl: (b, r)),
                pl.BlockSpec((bb, chunk), lambda b, r, tl: (b, r)),
            ],
            out_specs=pl.BlockSpec((bb, 1), lambda b, r, tl: (b, 0)),
            scratch_shapes=[pltpu.VMEM((bb, 1), jnp.float32)] * 5,
        ),
        compiler_params=pltpu.CompilerParams(
            dimension_semantics=("parallel", "arbitrary"),
        ),
    )(lengths, refs, ests)

    sdr = per_item  # (nb, 1), matches the torch pre-reduction shape

    if clip_min is not None:
        sdr = jnp.clip(sdr, clip_min)
    if reduction == "mean":
        sdr = jnp.mean(sdr)
    elif reduction == "sum":
        sdr = jnp.sum(sdr)
    return sdr


def _sisdr_ref(x, y, scaling=True, reduction="mean", zero_mean=True, clip_min=None):
    # Pure-JAX reference mirroring the PyTorch forward exactly (two-pass).
    eps = 1e-8
    nb = x.shape[0]
    references = x.reshape(nb, 1, -1).transpose(0, 2, 1).astype(jnp.float32)
    estimates = y.reshape(nb, 1, -1).transpose(0, 2, 1).astype(jnp.float32)
    if zero_mean:
        mean_reference = references.mean(axis=1, keepdims=True)
        mean_estimate = estimates.mean(axis=1, keepdims=True)
    else:
        mean_reference = 0
        mean_estimate = 0
    _references = references - mean_reference
    _estimates = estimates - mean_estimate
    references_projection = (_references ** 2).sum(axis=-2) + eps
    references_on_estimates = (_estimates * _references).sum(axis=-2) + eps
    scale = (references_on_estimates / references_projection)[:, None, :] if scaling else 1
    e_true = scale * _references
    e_res = _estimates - e_true
    signal = (e_true ** 2).sum(axis=1)
    noise = (e_res ** 2).sum(axis=1)
    sdr = -10 * jnp.log10(signal / noise + eps)
    if clip_min is not None:
        sdr = jnp.clip(sdr, clip_min)
    if reduction == "mean":
        sdr = sdr.mean()
    elif reduction == "sum":
        sdr = sdr.sum()
    return sdr


if __name__ == "__main__":
    key = jax.random.PRNGKey(0)
    k1, k2, k3, k4, k5, k6 = jax.random.split(key, 6)

    # Config 1: L multiple of 128, single chunk, SI-SDR, mean reduction.
    B, C, T = 2, 1, 2048
    refs = jax.random.normal(k1, (B, C, T), dtype=jnp.float32)
    ests = 0.9 * refs + 0.1 * jax.random.normal(k2, (B, C, T), dtype=jnp.float32)
    out = jax.block_until_ready(
        sisdr_loss(refs, ests, scaling=True, reduction="mean", zero_mean=True))
    exp = _sisdr_ref(refs, ests, scaling=True, reduction="mean", zero_mean=True)
    assert jnp.allclose(out, exp, rtol=1e-3, atol=1e-3), (out, exp)

    # Config 2: ragged L (in-kernel tail mask, no pad copy), SNR mode, sum.
    B2, C2, T2 = 3, 2, 1000
    r2 = jax.random.normal(k3, (B2, C2, T2), dtype=jnp.float32)
    e2 = 0.7 * r2 + 0.2 * jax.random.normal(k4, (B2, C2, T2), dtype=jnp.float32)
    out2 = jax.block_until_ready(
        sisdr_loss(r2, e2, scaling=False, reduction="sum", zero_mean=True))
    exp2 = _sisdr_ref(r2, e2, scaling=False, reduction="sum", zero_mean=True)
    assert jnp.allclose(out2, exp2, rtol=1e-3, atol=1e-3), (out2, exp2)

    # Config 3: longer ragged clips -> multiple length chunks + masked tail,
    # per-item reduction ("none") and the clip_min path. Tolerance is looser
    # because the single-pass moment form accumulates over ~100k samples.
    B3, C3, T3 = 8, 1, 100001
    r3 = jax.random.normal(k5, (B3, C3, T3), dtype=jnp.float32)
    e3 = 0.8 * r3 + 0.3 * jax.random.normal(k6, (B3, C3, T3), dtype=jnp.float32)
    out3 = jax.block_until_ready(
        sisdr_loss(r3, e3, reduction="none", clip_min=-100.0))
    exp3 = _sisdr_ref(r3, e3, reduction="none", clip_min=-100.0)
    assert out3.shape == (B3, 1), out3.shape
    assert jnp.allclose(out3, exp3, rtol=1e-2, atol=5e-2), (out3, exp3)

    print("KERNEL_OK")
</pallas_src>

<mosaic_0001>
module attributes {stable_mosaic.version = 11 : i64} {
  func.func @_sisdr_kernel(%arg0: i32, %arg1: i32, %arg2: memref<1xi32, #tpu.memory_space<smem>>, %arg3: memref<2x2048xf32, #tpu.memory_space<vmem>>, %arg4: memref<2x2048xf32, #tpu.memory_space<vmem>>, %arg5: memref<2x1xf32, #tpu.memory_space<vmem>>, %arg6: memref<2x1xf32, #tpu.memory_space<vmem>>, %arg7: memref<2x1xf32, #tpu.memory_space<vmem>>, %arg8: memref<2x1xf32, #tpu.memory_space<vmem>>, %arg9: memref<2x1xf32, #tpu.memory_space<vmem>>, %arg10: memref<2x1xf32, #tpu.memory_space<vmem>>) attributes {dimension_semantics = [#tpu.dimension_semantics<parallel>, #tpu.dimension_semantics<arbitrary>], iteration_bounds = array<i64: 1, 1>, scalar_prefetch = 1 : i64, scratch_operands = 5 : i64, tpu.core_type = #tpu.core_type<tc>, window_params = [{transform_indices = @transform_0, window_bounds = array<i64: 2, 2048>}, {transform_indices = @transform_1, window_bounds = array<i64: 2, 2048>}, {transform_indices = @transform_2, window_bounds = array<i64: 2, 1>}]} {
    %c0 = arith.constant 0 : index
    %0 = memref.load %arg2[%c0] : memref<1xi32, #tpu.memory_space<smem>>
    %c0_i32 = arith.constant 0 : i32
    %1 = arith.cmpi eq, %arg1, %c0_i32 : i32
    %2 = arith.extui %1 : i1 to i32
    %c0_i32_0 = arith.constant 0 : i32
    %3 = arith.cmpi ne, %2, %c0_i32_0 : i32
    scf.if %3 {
      %cst = arith.constant 0.000000e+00 : f32
      %15 = vector.broadcast %cst : f32 to vector<2x1xf32>
      %c0_5 = arith.constant 0 : index
      %c0_6 = arith.constant 0 : index
      %16 = vector.load %arg6[%c0_5, %c0_6] : memref<2x1xf32, #tpu.memory_space<vmem>>, vector<2x1xf32>
      tpu.vector_store %arg6[%c0_5, %c0_6], %15 {strides = array<i32>} : memref<2x1xf32, #tpu.memory_space<vmem>>, vector<2x1xf32>,
      %cst_7 = arith.constant 0.000000e+00 : f32
      %17 = vector.broadcast %cst_7 : f32 to vector<2x1xf32>
      %c0_8 = arith.constant 0 : index
      %c0_9 = arith.constant 0 : index
      %18 = vector.load %arg7[%c0_8, %c0_9] : memref<2x1xf32, #tpu.memory_space<vmem>>, vector<2x1xf32>
      tpu.vector_store %arg7[%c0_8, %c0_9], %17 {strides = array<i32>} : memref<2x1xf32, #tpu.memory_space<vmem>>, vector<2x1xf32>,
      %cst_10 = arith.constant 0.000000e+00 : f32
      %19 = vector.broadcast %cst_10 : f32 to vector<2x1xf32>
      %c0_11 = arith.constant 0 : index
      %c0_12 = arith.constant 0 : index
      %20 = vector.load %arg8[%c0_11, %c0_12] : memref<2x1xf32, #tpu.memory_space<vmem>>, vector<2x1xf32>
      tpu.vector_store %arg8[%c0_11, %c0_12], %19 {strides = array<i32>} : memref<2x1xf32, #tpu.memory_space<vmem>>, vector<2x1xf32>,
      %cst_13 = arith.constant 0.000000e+00 : f32
      %21 = vector.broadcast %cst_13 : f32 to vector<2x1xf32>
      %c0_14 = arith.constant 0 : index
      %c0_15 = arith.constant 0 : index
      %22 = vector.load %arg9[%c0_14, %c0_15] : memref<2x1xf32, #tpu.memory_space<vmem>>, vector<2x1xf32>
      tpu.vector_store %arg9[%c0_14, %c0_15], %21 {strides = array<i32>} : memref<2x1xf32, #tpu.memory_space<vmem>>, vector<2x1xf32>,
      %cst_16 = arith.constant 0.000000e+00 : f32
      %23 = vector.broadcast %cst_16 : f32 to vector<2x1xf32>
      %c0_17 = arith.constant 0 : index
      %c0_18 = arith.constant 0 : index
      %24 = vector.load %arg10[%c0_17, %c0_18] : memref<2x1xf32, #tpu.memory_space<vmem>>, vector<2x1xf32>
      tpu.vector_store %arg10[%c0_17, %c0_18], %23 {strides = array<i32>} : memref<2x1xf32, #tpu.memory_space<vmem>>, vector<2x1xf32>,
    } else {
    }
    %c1_i32 = arith.constant 1 : i32
    %4 = arith.addi %arg1, %c1_i32 : i32
    %c2048_i32 = arith.constant 2048 : i32
    %5 = arith.muli %4, %c2048_i32 : i32
    %6 = arith.cmpi sle, %5, %0 : i32
    %7 = arith.extui %6 : i1 to i32
    %c0_i32_1 = arith.constant 0 : i32
    %8 = arith.cmpi ne, %7, %c0_i32_1 : i32
    scf.if %8 {
      %c0_5 = arith.constant 0 : index
      %c0_6 = arith.constant 0 : index
      %15 = vector.load %arg3[%c0_5, %c0_6] : memref<2x2048xf32, #tpu.memory_space<vmem>>, vector<2x2048xf32>
      %c0_7 = arith.constant 0 : index
      %c0_8 = arith.constant 0 : index
      %16 = vector.load %arg4[%c0_7, %c0_8] : memref<2x2048xf32, #tpu.memory_space<vmem>>, vector<2x2048xf32>
      %c0_9 = arith.constant 0 : index
      %c0_10 = arith.constant 0 : index
      %17 = vector.load %arg6[%c0_9, %c0_10] : memref<2x1xf32, #tpu.memory_space<vmem>>, vector<2x1xf32>
      %cst = arith.constant dense<0.000000e+00> : vector<2xf32>
      %18 = vector.multi_reduction <add>, %15, %cst [1] : vector<2x2048xf32> to vector<2xf32>
      %19 = vector.shape_cast %18 : vector<2xf32> to vector<2x1xf32>
      %20 = arith.addf %17, %19 : vector<2x1xf32>
      %c0_11 = arith.constant 0 : index
      %c0_12 = arith.constant 0 : index
      %21 = vector.load %arg6[%c0_11, %c0_12] : memref<2x1xf32, #tpu.memory_space<vmem>>, vector<2x1xf32>
      tpu.vector_store %arg6[%c0_11, %c0_12], %20 {strides = array<i32>} : memref<2x1xf32, #tpu.memory_space<vmem>>, vector<2x1xf32>,
      %c0_13 = arith.constant 0 : index
      %c0_14 = arith.constant 0 : index
      %22 = vector.load %arg7[%c0_13, %c0_14] : memref<2x1xf32, #tpu.memory_space<vmem>>, vector<2x1xf32>
      %cst_15 = arith.constant dense<0.000000e+00> : vector<2xf32>
      %23 = vector.multi_reduction <add>, %16, %cst_15 [1] : vector<2x2048xf32> to vector<2xf32>
      %24 = vector.shape_cast %23 : vector<2xf32> to vector<2x1xf32>
      %25 = arith.addf %22, %24 : vector<2x1xf32>
      %c0_16 = arith.constant 0 : index
      %c0_17 = arith.constant 0 : index
      %26 = vector.load %arg7[%c0_16, %c0_17] : memref<2x1xf32, #tpu.memory_space<vmem>>, vector<2x1xf32>
      tpu.vector_store %arg7[%c0_16, %c0_17], %25 {strides = array<i32>} : memref<2x1xf32, #tpu.memory_space<vmem>>, vector<2x1xf32>,
      %c0_18 = arith.constant 0 : index
      %c0_19 = arith.constant 0 : index
      %27 = vector.load %arg8[%c0_18, %c0_19] : memref<2x1xf32, #tpu.memory_space<vmem>>, vector<2x1xf32>
      %28 = arith.mulf %15, %15 : vector<2x2048xf32>
      %cst_20 = arith.constant dense<0.000000e+00> : vector<2xf32>
      %29 = vector.multi_reduction <add>, %28, %cst_20 [1] : vector<2x2048xf32> to vector<2xf32>
      %30 = vector.shape_cast %29 : vector<2xf32> to vector<2x1xf32>
      %31 = arith.addf %27, %30 : vector<2x1xf32>
      %c0_21 = arith.constant 0 : index
      %c0_22 = arith.constant 0 : index
      %32 = vector.load %arg8[%c0_21, %c0_22] : memref<2x1xf32, #tpu.memory_space<vmem>>, vector<2x1xf32>
      tpu.vector_store %arg8[%c0_21, %c0_22], %31 {strides = array<i32>} : memref<2x1xf32, #tpu.memory_space<vmem>>, vector<2x1xf32>,
      %c0_23 = arith.constant 0 : index
      %c0_24 = arith.constant 0 : index
      %33 = vector.load %arg9[%c0_23, %c0_24] : memref<2x1xf32, #tpu.memory_space<vmem>>, vector<2x1xf32>
      %34 = arith.mulf %16, %16 : vector<2x2048xf32>
      %cst_25 = arith.constant dense<0.000000e+00> : vector<2xf32>
      %35 = vector.multi_reduction <add>, %34, %cst_25 [1] : vector<2x2048xf32> to vector<2xf32>
      %36 = vector.shape_cast %35 : vector<2xf32> to vector<2x1xf32>
      %37 = arith.addf %33, %36 : vector<2x1xf32>
      %c0_26 = arith.constant 0 : index
      %c0_27 = arith.constant 0 : index
      %38 = vector.load %arg9[%c0_26, %c0_27] : memref<2x1xf32, #tpu.memory_space<vmem>>, vector<2x1xf32>
      tpu.vector_store %arg9[%c0_26, %c0_27], %37 {strides = array<i32>} : memref<2x1xf32, #tpu.memory_space<vmem>>, vector<2x1xf32>,
      %c0_28 = arith.constant 0 : index
      %c0_29 = arith.constant 0 : index
      %39 = vector.load %arg10[%c0_28, %c0_29] : memref<2x1xf32, #tpu.memory_space<vmem>>, vector<2x1xf32>
      %40 = arith.mulf %15, %16 : vector<2x2048xf32>
      %cst_30 = arith.constant dense<0.000000e+00> : vector<2xf32>
      %41 = vector.multi_reduction <add>, %40, %cst_30 [1] : vector<2x2048xf32> to vector<2xf32>
      %42 = vector.shape_cast %41 : vector<2xf32> to vector<2x1xf32>
      %43 = arith.addf %39, %42 : vector<2x1xf32>
      %c0_31 = arith.constant 0 : index
      %c0_32 = arith.constant 0 : index
      %44 = vector.load %arg10[%c0_31, %c0_32] : memref<2x1xf32, #tpu.memory_space<vmem>>, vector<2x1xf32>
      tpu.vector_store %arg10[%c0_31, %c0_32], %43 {strides = array<i32>} : memref<2x1xf32, #tpu.memory_space<vmem>>, vector<2x1xf32>,
    } else {
    }
    %true = arith.constant true
    %9 = arith.xori %6, %true : i1
    %10 = arith.extui %9 : i1 to i32
    %c0_i32_2 = arith.constant 0 : i32
    %11 = arith.cmpi ne, %10, %c0_i32_2 : i32
    scf.if %11 {
      %c2048_i32_5 = arith.constant 2048 : i32
      %15 = arith.muli %arg1, %c2048_i32_5 : i32
      %16 = arith.subi %0, %15 : i32
      %17 = tpu.iota {dimensions = array<i32: 1>} : vector<2x2048xi32>
      %18 = vector.broadcast %16 : i32 to vector<2x2048xi32>
      %19 = arith.cmpi slt, %17, %18 : vector<2x2048xi32>
      %c0_6 = arith.constant 0 : index
      %c0_7 = arith.constant 0 : index
      %20 = vector.load %arg3[%c0_6, %c0_7] : memref<2x2048xf32, #tpu.memory_space<vmem>>, vector<2x2048xf32>
      %cst = arith.constant 0.000000e+00 : f32
      %21 = vector.broadcast %cst : f32 to vector<2x2048xf32>
      %22 = arith.select %19, %20, %21 : vector<2x2048xi1>, vector<2x2048xf32>
      %c0_8 = arith.constant 0 : index
      %c0_9 = arith.constant 0 : index
      %23 = vector.load %arg4[%c0_8, %c0_9] : memref<2x2048xf32, #tpu.memory_space<vmem>>, vector<2x2048xf32>
      %cst_10 = arith.constant 0.000000e+00 : f32
      %24 = vector.broadcast %cst_10 : f32 to vector<2x2048xf32>
      %25 = arith.select %19, %23, %24 : vector<2x2048xi1>, vector<2x2048xf32>
      %c0_11 = arith.constant 0 : index
      %c0_12 = arith.constant 0 : index
      %26 = vector.load %arg6[%c0_11, %c0_12] : memref<2x1xf32, #tpu.memory_space<vmem>>, vector<2x1xf32>
      %cst_13 = arith.constant dense<0.000000e+00> : vector<2xf32>
      %27 = vector.multi_reduction <add>, %22, %cst_13 [1] : vector<2x2048xf32> to vector<2xf32>
      %28 = vector.shape_cast %27 : vector<2xf32> to vector<2x1xf32>
      %29 = arith.addf %26, %28 : vector<2x1xf32>
      %c0_14 = arith.constant 0 : index
      %c0_15 = arith.constant 0 : index
      %30 = vector.load %arg6[%c0_14, %c0_15] : memref<2x1xf32, #tpu.memory_space<vmem>>, vector<2x1xf32>
      tpu.vector_store %arg6[%c0_14, %c0_15], %29 {strides = array<i32>} : memref<2x1xf32, #tpu.memory_space<vmem>>, vector<2x1xf32>,
      %c0_16 = arith.constant 0 : index
      %c0_17 = arith.constant 0 : index
      %31 = vector.load %arg7[%c0_16, %c0_17] : memref<2x1xf32, #tpu.memory_space<vmem>>, vector<2x1xf32>
      %cst_18 = arith.constant dense<0.000000e+00> : vector<2xf32>
      %32 = vector.multi_reduction <add>, %25, %cst_18 [1] : vector<2x2048xf32> to vector<2xf32>
      %33 = vector.shape_cast %32 : vector<2xf32> to vector<2x1xf32>
      %34 = arith.addf %31, %33 : vector<2x1xf32>
      %c0_19 = arith.constant 0 : index
      %c0_20 = arith.constant 0 : index
      %35 = vector.load %arg7[%c0_19, %c0_20] : memref<2x1xf32, #tpu.memory_space<vmem>>, vector<2x1xf32>
      tpu.vector_store %arg7[%c0_19, %c0_20], %34 {strides = array<i32>} : memref<2x1xf32, #tpu.memory_space<vmem>>, vector<2x1xf32>,
      %c0_21 = arith.constant 0 : index
      %c0_22 = arith.constant 0 : index
      %36 = vector.load %arg8[%c0_21, %c0_22] : memref<2x1xf32, #tpu.memory_space<vmem>>, vector<2x1xf32>
      %37 = arith.mulf %22, %22 : vector<2x2048xf32>
      %cst_23 = arith.constant dense<0.000000e+00> : vector<2xf32>
      %38 = vector.multi_reduction <add>, %37, %cst_23 [1] : vector<2x2048xf32> to vector<2xf32>
      %39 = vector.shape_cast %38 : vector<2xf32> to vector<2x1xf32>
      %40 = arith.addf %36, %39 : vector<2x1xf32>
      %c0_24 = arith.constant 0 : index
      %c0_25 = arith.constant 0 : index
      %41 = vector.load %arg8[%c0_24, %c0_25] : memref<2x1xf32, #tpu.memory_space<vmem>>, vector<2x1xf32>
      tpu.vector_store %arg8[%c0_24, %c0_25], %40 {strides = array<i32>} : memref<2x1xf32, #tpu.memory_space<vmem>>, vector<2x1xf32>,
      %c0_26 = arith.constant 0 : index
      %c0_27 = arith.constant 0 : index
      %42 = vector.load %arg9[%c0_26, %c0_27] : memref<2x1xf32, #tpu.memory_space<vmem>>, vector<2x1xf32>
      %43 = arith.mulf %25, %25 : vector<2x2048xf32>
      %cst_28 = arith.constant dense<0.000000e+00> : vector<2xf32>
      %44 = vector.multi_reduction <add>, %43, %cst_28 [1] : vector<2x2048xf32> to vector<2xf32>
      %45 = vector.shape_cast %44 : vector<2xf32> to vector<2x1xf32>
      %46 = arith.addf %42, %45 : vector<2x1xf32>
      %c0_29 = arith.constant 0 : index
      %c0_30 = arith.constant 0 : index
      %47 = vector.load %arg9[%c0_29, %c0_30] : memref<2x1xf32, #tpu.memory_space<vmem>>, vector<2x1xf32>
      tpu.vector_store %arg9[%c0_29, %c0_30], %46 {strides = array<i32>} : memref<2x1xf32, #tpu.memory_space<vmem>>, vector<2x1xf32>,
      %c0_31 = arith.constant 0 : index
      %c0_32 = arith.constant 0 : index
      %48 = vector.load %arg10[%c0_31, %c0_32] : memref<2x1xf32, #tpu.memory_space<vmem>>, vector<2x1xf32>
      %49 = arith.mulf %22, %25 : vector<2x2048xf32>
      %cst_33 = arith.constant dense<0.000000e+00> : vector<2xf32>
      %50 = vector.multi_reduction <add>, %49, %cst_33 [1] : vector<2x2048xf32> to vector<2xf32>
      %51 = vector.shape_cast %50 : vector<2xf32> to vector<2x1xf32>
      %52 = arith.addf %48, %51 : vector<2x1xf32>
      %c0_34 = arith.constant 0 : index
      %c0_35 = arith.constant 0 : index
      %53 = vector.load %arg10[%c0_34, %c0_35] : memref<2x1xf32, #tpu.memory_space<vmem>>, vector<2x1xf32>
      tpu.vector_store %arg10[%c0_34, %c0_35], %52 {strides = array<i32>} : memref<2x1xf32, #tpu.memory_space<vmem>>, vector<2x1xf32>,
    } else {
    }
    %c0_i32_3 = arith.constant 0 : i32
    %12 = arith.cmpi eq, %arg1, %c0_i32_3 : i32
    %13 = arith.extui %12 : i1 to i32
    %c0_i32_4 = arith.constant 0 : i32
    %14 = arith.cmpi ne, %13, %c0_i32_4 : i32
    scf.if %14 {
      %15 = arith.sitofp %0 : i32 to f32
      %c0_5 = arith.constant 0 : index
      %c0_6 = arith.constant 0 : index
      %16 = vector.load %arg6[%c0_5, %c0_6] : memref<2x1xf32, #tpu.memory_space<vmem>>, vector<2x1xf32>
      %c0_7 = arith.constant 0 : index
      %c0_8 = arith.constant 0 : index
      %17 = vector.load %arg7[%c0_7, %c0_8] : memref<2x1xf32, #tpu.memory_space<vmem>>, vector<2x1xf32>
      %c0_9 = arith.constant 0 : index
      %c0_10 = arith.constant 0 : index
      %18 = vector.load %arg8[%c0_9, %c0_10] : memref<2x1xf32, #tpu.memory_space<vmem>>, vector<2x1xf32>
      %c0_11 = arith.constant 0 : index
      %c0_12 = arith.constant 0 : index
      %19 = vector.load %arg9[%c0_11, %c0_12] : memref<2x1xf32, #tpu.memory_space<vmem>>, vector<2x1xf32>
      %c0_13 = arith.constant 0 : index
      %c0_14 = arith.constant 0 : index
      %20 = vector.load %arg10[%c0_13, %c0_14] : memref<2x1xf32, #tpu.memory_space<vmem>>, vector<2x1xf32>
      %21 = vector.broadcast %15 : f32 to vector<2x1xf32>
      %22 = arith.divf %16, %21 : vector<2x1xf32>
      %23 = vector.broadcast %15 : f32 to vector<2x1xf32>
      %24 = arith.divf %17, %23 : vector<2x1xf32>
      %25 = vector.broadcast %15 : f32 to vector<2x1xf32>
      %26 = arith.mulf %25, %22 : vector<2x1xf32>
      %27 = arith.mulf %26, %22 : vector<2x1xf32>
      %28 = arith.subf %18, %27 : vector<2x1xf32>
      %cst = arith.constant 0.000000e+00 : f32
      %29 = vector.broadcast %cst : f32 to vector<2x1xf32>
      %30 = arith.maximumf %28, %29 : vector<2x1xf32>
      %31 = vector.broadcast %15 : f32 to vector<2x1xf32>
      %32 = arith.mulf %31, %24 : vector<2x1xf32>
      %33 = arith.mulf %32, %24 : vector<2x1xf32>
      %34 = arith.subf %19, %33 : vector<2x1xf32>
      %cst_15 = arith.constant 0.000000e+00 : f32
      %35 = vector.broadcast %cst_15 : f32 to vector<2x1xf32>
      %36 = arith.maximumf %34, %35 : vector<2x1xf32>
      %37 = vector.broadcast %15 : f32 to vector<2x1xf32>
      %38 = arith.mulf %37, %22 : vector<2x1xf32>
      %39 = arith.mulf %38, %24 : vector<2x1xf32>
      %40 = arith.subf %20, %39 : vector<2x1xf32>
      %cst_16 = arith.constant 9.99999993E-9 : f32
      %41 = vector.broadcast %cst_16 : f32 to vector<2x1xf32>
      %42 = arith.addf %40, %41 : vector<2x1xf32>
      %cst_17 = arith.constant 9.99999993E-9 : f32
      %43 = vector.broadcast %cst_17 : f32 to vector<2x1xf32>
      %44 = arith.addf %30, %43 : vector<2x1xf32>
      %45 = arith.divf %42, %44 : vector<2x1xf32>
      %46 = arith.mulf %45, %45 : vector<2x1xf32>
      %47 = arith.mulf %46, %30 : vector<2x1xf32>
      %cst_18 = arith.constant 2.000000e+00 : f32
      %48 = vector.broadcast %cst_18 : f32 to vector<2x1xf32>
      %49 = arith.mulf %48, %45 : vector<2x1xf32>
      %50 = arith.mulf %49, %40 : vector<2x1xf32>
      %51 = arith.subf %36, %50 : vector<2x1xf32>
      %52 = arith.mulf %45, %45 : vector<2x1xf32>
      %53 = arith.mulf %52, %30 : vector<2x1xf32>
      %54 = arith.addf %51, %53 : vector<2x1xf32>
      %cst_19 = arith.constant 1.000000e-30 : f32
      %55 = vector.broadcast %cst_19 : f32 to vector<2x1xf32>
      %56 = arith.maximumf %54, %55 : vector<2x1xf32>
      %57 = arith.divf %47, %56 : vector<2x1xf32>
      %cst_20 = arith.constant 9.99999993E-9 : f32
      %58 = vector.broadcast %cst_20 : f32 to vector<2x1xf32>
      %59 = arith.addf %57, %58 : vector<2x1xf32>
      %60 = math.log %59 : vector<2x1xf32>
      %cst_21 = arith.constant -1.000000e+01 : f32
      %61 = vector.broadcast %cst_21 : f32 to vector<2x1xf32>
      %62 = arith.mulf %61, %60 : vector<2x1xf32>
      %cst_22 = arith.constant 0.434294492 : f32
      %63 = vector.broadcast %cst_22 : f32 to vector<2x1xf32>
      %64 = arith.mulf %62, %63 : vector<2x1xf32>
      %c0_23 = arith.constant 0 : index
      %c0_24 = arith.constant 0 : index
      %65 = vector.load %arg5[%c0_23, %c0_24] : memref<2x1xf32, #tpu.memory_space<vmem>>, vector<2x1xf32>
      tpu.vector_store %arg5[%c0_23, %c0_24], %64 {strides = array<i32>} : memref<2x1xf32, #tpu.memory_space<vmem>>, vector<2x1xf32>,
    } else {
    }
    return
  }
  func.func @transform_0(%arg0: i32, %arg1: i32, %arg2: memref<1xi32, #tpu.memory_space<smem>>) -> (i32, i32) {
    %c0_i32 = arith.constant 0 : i32
    return %arg0, %arg1 : i32, i32
  }
  func.func @transform_1(%arg0: i32, %arg1: i32, %arg2: memref<1xi32, #tpu.memory_space<smem>>) -> (i32, i32) {
    %c0_i32 = arith.constant 0 : i32
    return %arg0, %arg1 : i32, i32
  }
  func.func @transform_2(%arg0: i32, %arg1: i32, %arg2: memref<1xi32, #tpu.memory_space<smem>>) -> (i32, i32) {
    %c0_i32 = arith.constant 0 : i32
    %c0_i32_0 = arith.constant 0 : i32
    return %arg0, %c0_i32 : i32, i32
  }
}

</mosaic_0001>

<bundles_post_ra>
// kernel: tpu_custom_call.1
= control target key start
LH: loop header
LB: loop body
LE: loop exit
PB: predicated region body
PF: predicated region fallthrough
CT: control target
= control target key end

     0   :  { %9 = vsyncpa [#allocation10], 0  ;;  %s1751_s0 = inlined_call_operand.<no memory space> [shape: s32[1], index: 0, kind: input, shape index: {}]   ;;  %s1752_s1 = inlined_call_operand.hbm [shape: f32[2,2048], index: 1, kind: input, shape index: {}]   ;;  %s1753_s2 = inlined_call_operand.hbm [shape: f32[2,2048], index: 2, kind: input, shape index: {}]   ;;  %s1754_s3 = inlined_call_operand.vmem [shape: f32[2,1], index: 3, kind: output, shape index: {}]  }
   0x1   :  { %s16_s14 = sshll.u32 %s1752_s1, 4  ;;  %s17_s14 = int_to_ptr.hbm [resolvable:$true] %s16_s14 }
   0x2   :  { %10 = vsyncpa [#allocation12], 0  ;;  %s1012_s15 = smov [#allocation9]   ;;  %s27_s19 = sshll.u32 %s1753_s2, 4  ;;  %s28_s19 = int_to_ptr.hbm [resolvable:$true] %s27_s19 }
   0x3   :  { %s18_s16 = sshll.u32 %s1012_s15, 4  ;;  %s1013_s20 = smov [#allocation11]   ;;  %s19_s16 = int_to_ptr.vmem [resolvable:$true] %s18_s16 }
   0x4   :  { %21 = dma.hbm_to_vmem [thread:$0]  %s17_s14, 512, %s19_s16, [#allocation10]  }
   0x5   :  { %s29_s21 = sshll.u32 %s1013_s20, 4  ;;  %s30_s21 = int_to_ptr.vmem [resolvable:$true] %s29_s21 }
   0x6   :  { %32 = dma.hbm_to_vmem [thread:$0]  %s28_s19, 512, %s30_s21, [#allocation12]  }
   0x7   :  { %1008 = dma.done.wait [#allocation10], 512  }
   0x8   :  { %1009 = vsyncadd [#allocation10], 4294966784 }
   0x9   :  { %1010 = dma.done.wait [#allocation12], 512  }
   0xa   :  { %1011 = vsyncadd [#allocation12], 4294966784  ;;  %vm1755_vm0 = vcmask 1024   ;;  %v1014_v0 = vmov 0.0   ;;  %p946_p0 = scmp.lt.s32.totalorder %s1751_s0, 2048 }
   0xb   :  { %47 = vst.msk [vmem:[#allocation2] sm:$0x3] %vm1755_vm0, %v1014_v0 }
   0xc   :  { %48 = vst.msk [vmem:[#allocation3] sm:$0x3] %vm1755_vm0, %v1014_v0  ;;  %57 = sbr.rel (%p946_p0) target bundleno = 267 (0x10b), region = 25 }
   0xd   :  { %49 = vst.msk [vmem:[#allocation4] sm:$0x3] %vm1755_vm0, %v1014_v0 }
   0xe   :  { %50 = vst.msk [vmem:[#allocation5] sm:$0x3] %vm1755_vm0, %v1014_v0 }
   0xf   :  { %51 = vst.msk [vmem:[#allocation6] sm:$0x3] %vm1755_vm0, %v1014_v0 }
  0x11   :  { %v58_v1 = vld [vmem:[#allocation9] sm:$0xff]  ;;  %v1049_v2 = vld [vmem:[#allocation9 + $0x8] sm:$0xff]  ;;  %v1052_v3 = vld [vmem:[#allocation9 + $0x10] sm:$0xff]  ;;  %vm108_vm1 = vcmask 1041408  }
  0x12   :  { %71 = vst [vmem:[#allocation1] ss:$4 sm:$0xff] %v58_v1  ;;  %v1054_v4 = vld [vmem:[#allocation9 + $0x18] sm:$0xff]  ;;  %v1074_v13 = vld [vmem:[#allocation11] sm:$0xff]  ;;  %v1076_v14 = vld [vmem:[#allocation11 + $0x8] sm:$0xff]  ;;  %v223_v35 = vmul.f32 %v58_v1, %v58_v1  ;;  %v224_v38 = vmul.f32 %v1049_v2, %v1049_v2  ;;  %v225_v43 = vmul.f32 %v1052_v3, %v1052_v3 }
  0x13   :  { %73 = vst [vmem:[#allocation1 + $0x20] ss:$4 sm:$0xff] %v1049_v2  ;;  %v1096_v23 = vld [vmem:[#allocation11 + $0x10] sm:$0xff]  ;;  %v1098_v24 = vld [vmem:[#allocation11 + $0x18] sm:$0xff]  ;;  %v226_v46 = vmul.f32 %v1054_v4, %v1054_v4  ;;  %v1141_v49 = vmul.f32 %v1074_v13, %v58_v1  ;;  %v1149_v59 = vmul.f32 %v1076_v14, %v1049_v2 }
  0x14   :  { %v1153_v60 = vmul.f32 %v1096_v23, %v1052_v3  ;;  %v1157_v61 = vmul.f32 %v1098_v24, %v1054_v4 }
  0x19   :  { %v1056_v5 = vld.sshfl [vmem:[#allocation1] sm:$0xff pattern:$0x73625140]  ;;  %v1058_v6 = vld.sshfl [vmem:[#allocation1 + $0x8] sm:$0xff pattern:$0x73625140] }
  0x1a   :  { %v1060_v7 = vld.sshfl [vmem:[#allocation1 + $0x10] sm:$0xff pattern:$0x73625140]  ;;  %v1062_v8 = vld.sshfl [vmem:[#allocation1 + $0x18] sm:$0xff pattern:$0x73625140] }
  0x1b   :  { %v1064_v9 = vld.sshfl [vmem:[#allocation1 + $0x20] sm:$0xff pattern:$0x73625140]  ;;  %v1066_v10 = vld.sshfl [vmem:[#allocation1 + $0x28] sm:$0xff pattern:$0x73625140] }
  0x1c   :  { %v1068_v11 = vld.sshfl [vmem:[#allocation1 + $0x30] sm:$0xff pattern:$0x73625140]  ;;  %v1070_v12 = vld.sshfl [vmem:[#allocation1 + $0x38] sm:$0xff pattern:$0x73625140] }
  0x1d   :  { %82 = vst [vmem:[#allocation1] ss:$4 sm:$0xff] %v1052_v3  ;;  %v109_v63 = vsel %vm108_vm1, %v1056_v5, 0.0  ;;  %v110_v0 = vsel %vm108_vm1, %v1058_v6, 0.0  ;;  %v112_v1 = vsel %vm108_vm1, %v1060_v7, 0.0  ;;  %v116_v6 = vsel %vm108_vm1, %v1064_v9, 0.0 }
  0x1e   :  { %83 = vst [vmem:[#allocation1 + $0x20] ss:$4 sm:$0xff] %v1054_v4  ;;  %v114_v4 = vsel %vm108_vm1, %v1062_v8, 0.0  ;;  %v118_v7 = vsel %vm108_vm1, %v1066_v10, 0.0  ;;  %v305_v8 = vmul.f32 %v1076_v14, %v1076_v14  ;;  %v120_v10 = vsel %vm108_vm1, %v1068_v11, 0.0 }
  0x24   :  { %v1078_v15 = vld.sshfl [vmem:[#allocation1] sm:$0xff pattern:$0x73625140]  ;;  %v1080_v16 = vld.sshfl [vmem:[#allocation1 + $0x8] sm:$0xff pattern:$0x73625140] }
  0x25   :  { %v1082_v17 = vld.sshfl [vmem:[#allocation1 + $0x10] sm:$0xff pattern:$0x73625140]  ;;  %v1084_v18 = vld.sshfl [vmem:[#allocation1 + $0x18] sm:$0xff pattern:$0x73625140] }
  0x26   :  { %v1086_v19 = vld.sshfl [vmem:[#allocation1 + $0x20] sm:$0xff pattern:$0x73625140]  ;;  %v1088_v20 = vld.sshfl [vmem:[#allocation1 + $0x28] sm:$0xff pattern:$0x73625140] }
  0x27   :  { %v1090_v21 = vld.sshfl [vmem:[#allocation1 + $0x30] sm:$0xff pattern:$0x73625140]  ;;  %v1092_v22 = vld.sshfl [vmem:[#allocation1 + $0x38] sm:$0xff pattern:$0x73625140] }
  0x28   :  { %150 = vst [vmem:[#allocation1] ss:$4 sm:$0xff] %v1074_v13  ;;  %v130_v11 = vsel %vm108_vm1, %v1084_v18, 0.0 }
  0x29   :  { %152 = vst [vmem:[#allocation1 + $0x20] ss:$4 sm:$0xff] %v1076_v14  ;;  %v124_v14 = vsel %vm108_vm1, %v1078_v15, 0.0 }
  0x2f   :  { %v1100_v25 = vld.sshfl [vmem:[#allocation1] sm:$0xff pattern:$0x73625140]  ;;  %v1102_v26 = vld.sshfl [vmem:[#allocation1 + $0x8] sm:$0xff pattern:$0x73625140] }
  0x30   :  { %v1104_v27 = vld.sshfl [vmem:[#allocation1 + $0x10] sm:$0xff pattern:$0x73625140]  ;;  %v1106_v28 = vld.sshfl [vmem:[#allocation1 + $0x18] sm:$0xff pattern:$0x73625140] }
  0x31   :  { %v1108_v29 = vld.sshfl [vmem:[#allocation1 + $0x20] sm:$0xff pattern:$0x73625140]  ;;  %v1110_v30 = vld.sshfl [vmem:[#allocation1 + $0x28] sm:$0xff pattern:$0x73625140] }
  0x32   :  { %v1112_v31 = vld.sshfl [vmem:[#allocation1 + $0x30] sm:$0xff pattern:$0x73625140]  ;;  %v1114_v32 = vld.sshfl [vmem:[#allocation1 + $0x38] sm:$0xff pattern:$0x73625140] }
  0x33   :  { %161 = vst [vmem:[#allocation1] ss:$4 sm:$0xff] %v1096_v23  ;;  %v187_v15 = vsel %vm108_vm1, %v1100_v25, 0.0  ;;  %v192_v25 = vsel %vm108_vm1, %v1106_v28, 0.0 }
  0x34   :  { %162 = vst [vmem:[#allocation1 + $0x20] ss:$4 sm:$0xff] %v1098_v24 }
  0x3a   :  { %v1118_v33 = vld.sshfl [vmem:[#allocation1] sm:$0xff pattern:$0x73625140]  ;;  %v1120_v34 = vld.sshfl [vmem:[#allocation1 + $0x8] sm:$0xff pattern:$0x73625140] }
  0x3b   :  { %v1122_v36 = vld.sshfl [vmem:[#allocation1 + $0x10] sm:$0xff pattern:$0x73625140]  ;;  %v1124_v37 = vld.sshfl [vmem:[#allocation1 + $0x18] sm:$0xff pattern:$0x73625140] }
  0x3c   :  { %v1128_v39 = vld.sshfl [vmem:[#allocation1 + $0x20] sm:$0xff pattern:$0x73625140]  ;;  %v1130_v40 = vld.sshfl [vmem:[#allocation1 + $0x28] sm:$0xff pattern:$0x73625140] }
  0x3d   :  { %v1132_v41 = vld.sshfl [vmem:[#allocation1 + $0x30] sm:$0xff pattern:$0x73625140]  ;;  %v1134_v42 = vld.sshfl [vmem:[#allocation1 + $0x38] sm:$0xff pattern:$0x73625140] }
  0x3e   :  { %231 = vst [vmem:[#allocation1] ss:$4 sm:$0xff] %v223_v35  ;;  %v111_v35 = vadd.f32 %v110_v0, %v109_v63  ;;  %v126_v63 = vsel %vm108_vm1, %v1080_v16, 0.0  ;;  %v188_v16 = vsel %vm108_vm1, %v1102_v26, 0.0  ;;  %v306_v26 = vmul.f32 %v1096_v23, %v1096_v23 }
  0x3f   :  { %233 = vst [vmem:[#allocation1 + $0x20] ss:$4 sm:$0xff] %v224_v38  ;;  %v132_v23 = vsel %vm108_vm1, %v1086_v19, 0.0 }
  0x40   :  { %v113_v5 = vadd.f32 %v112_v1, %v111_v35 }
  0x45   :  { %v234_v44 = vld.sshfl [vmem:[#allocation1] sm:$0xff pattern:$0x73625140]  ;;  %v235_v45 = vld.sshfl [vmem:[#allocation1 + $0x8] sm:$0xff pattern:$0x73625140] }
  0x46   :  { %v236_v47 = vld.sshfl [vmem:[#allocation1 + $0x10] sm:$0xff pattern:$0x73625140]  ;;  %v237_v48 = vld.sshfl [vmem:[#allocation1 + $0x18] sm:$0xff pattern:$0x73625140] }
  0x47   :  { %v238_v50 = vld.sshfl [vmem:[#allocation1 + $0x20] sm:$0xff pattern:$0x73625140]  ;;  %v239_v51 = vld.sshfl [vmem:[#allocation1 + $0x28] sm:$0xff pattern:$0x73625140] }
  0x48   :  { %v240_v52 = vld.sshfl [vmem:[#allocation1 + $0x30] sm:$0xff pattern:$0x73625140]  ;;  %v241_v53 = vld.sshfl [vmem:[#allocation1 + $0x38] sm:$0xff pattern:$0x73625140] }
  0x49   :  { %242 = vst [vmem:[#allocation1] ss:$4 sm:$0xff] %v225_v43  ;;  %v268_v54 = vsel %vm108_vm1, %v234_v44, 0.0  ;;  %v269_v55 = vsel %vm108_vm1, %v235_v45, 0.0  ;;  %v271_v56 = vsel %vm108_vm1, %v236_v47, 0.0  ;;  %v273_v58 = vsel %vm108_vm1, %v237_v48, 0.0 }
  0x4a   :  { %243 = vst [vmem:[#allocation1 + $0x20] ss:$4 sm:$0xff] %v226_v46  ;;  %v270_v57 = vadd.f32 %v269_v55, %v268_v54  ;;  %v275_v2 = vsel %vm108_vm1, %v238_v50, 0.0  ;;  %v277_v3 = vsel %vm108_vm1, %v239_v51, 0.0  ;;  %v279_v43 = vsel %vm108_vm1, %v240_v52, 0.0 }
  0x4b   :  { %v281_v44 = vsel %vm108_vm1, %v241_v53, 0.0  ;;  %v304_v48 = vmul.f32 %v1074_v13, %v1074_v13  ;;  %v115_v52 = vadd.f32 %v114_v4, %v113_v5  ;;  %v122_v13 = vsel %vm108_vm1, %v1070_v12, 0.0 }
  0x4c   :  { %v272_v62 = vadd.f32 %v271_v56, %v270_v57  ;;  %v189_v5 = vadd.f32 %v188_v16, %v187_v15 }
  0x4d   :  { %v117_v57 = vadd.f32 %v116_v6, %v115_v52 }
  0x4e   :  { %v274_v38 = vadd.f32 %v273_v58, %v272_v62 }
  0x4f   :  { %v119_v1 = vadd.f32 %v118_v7, %v117_v57 }
  0x50   :  { %v244_v45 = vld.sshfl [vmem:[#allocation1] sm:$0xff pattern:$0x73625140]  ;;  %v245_v46 = vld.sshfl [vmem:[#allocation1 + $0x8] sm:$0xff pattern:$0x73625140]  ;;  %v276_v47 = vadd.f32 %v275_v2, %v274_v38 }
  0x51   :  { %v246_v50 = vld.sshfl [vmem:[#allocation1 + $0x10] sm:$0xff pattern:$0x73625140]  ;;  %v247_v51 = vld.sshfl [vmem:[#allocation1 + $0x18] sm:$0xff pattern:$0x73625140] }
  0x52   :  { %v248_v53 = vld.sshfl [vmem:[#allocation1 + $0x20] sm:$0xff pattern:$0x73625140]  ;;  %v249_v54 = vld.sshfl [vmem:[#allocation1 + $0x28] sm:$0xff pattern:$0x73625140]  ;;  %v278_v55 = vadd.f32 %v277_v3, %v276_v47 }
  0x53   :  { %v250_v56 = vld.sshfl [vmem:[#allocation1 + $0x30] sm:$0xff pattern:$0x73625140]  ;;  %v251_v9 = vld.sshfl [vmem:[#allocation1 + $0x38] sm:$0xff pattern:$0x73625140] }
  0x54   :  { %v280_v58 = vadd.f32 %v279_v43, %v278_v55  ;;  %312 = vst [vmem:[#allocation1] ss:$4 sm:$0xff] %v304_v48  ;;  %v283_v62 = vsel %vm108_vm1, %v244_v45, 0.0  ;;  %v128_v2 = vsel %vm108_vm1, %v1082_v17, 0.0  ;;  %v285_v35 = vsel %vm108_vm1, %v245_v46, 0.0 }
  0x55   :  { %314 = vst [vmem:[#allocation1 + $0x20] ss:$4 sm:$0xff] %v305_v8  ;;  %v287_v38 = vsel %vm108_vm1, %v246_v50, 0.0  ;;  %v289_v12 = vsel %vm108_vm1, %v247_v51, 0.0  ;;  %v121_v43 = vadd.f32 %v120_v10, %v119_v1  ;;  %v190_v17 = vsel %vm108_vm1, %v1104_v27, 0.0 }
  0x56   :  { %v282_v0 = vadd.f32 %v281_v44, %v280_v58  ;;  %v291_v4 = vsel %vm108_vm1, %v248_v53, 0.0  ;;  %v293_v18 = vsel %vm108_vm1, %v249_v54, 0.0  ;;  %v295_v44 = vsel %vm108_vm1, %v250_v56, 0.0 }
  0x57   :  { %v297_v7 = vsel %vm108_vm1, %v251_v9, 0.0  ;;  %v123_v45 = vadd.f32 %v122_v13, %v121_v43  ;;  %v191_v27 = vadd.f32 %v190_v17, %v189_v5  ;;  %v307_v50 = vmul.f32 %v1098_v24, %v1098_v24 }
  0x58   :  { %v284_v3 = vadd.f32 %v283_v62, %v282_v0  ;;  %v138_v1 = vsel %vm108_vm1, %v1092_v22, 0.0  ;;  %v196_v43 = vsel %vm108_vm1, %v1110_v30, 0.0  ;;  %v202_v5 = vsel %vm108_vm1, %v1118_v33, 0.0 }
  0x59   :  { %v125_v52 = vadd.f32 %v124_v14, %v123_v45  ;;  %v193_v28 = vadd.f32 %v192_v25, %v191_v27  ;;  %v134_v14 = vsel %vm108_vm1, %v1088_v20, 0.0 }
  0x5a   :  { %v286_v6 = vadd.f32 %v285_v35, %v284_v3  ;;  %v194_v35 = vsel %vm108_vm1, %v1108_v29, 0.0 }
  0x5b   :  { %v315_v46 = vld.sshfl [vmem:[#allocation1] sm:$0xff pattern:$0x73625140]  ;;  %v316_v47 = vld.sshfl [vmem:[#allocation1 + $0x8] sm:$0xff pattern:$0x73625140]  ;;  %v127_v57 = vadd.f32 %v126_v63, %v125_v52  ;;  %v195_v3 = vadd.f32 %v194_v35, %v193_v28 }
  0x5c   :  { %v288_v48 = vadd.f32 %v287_v38, %v286_v6  ;;  %v317_v51 = vld.sshfl [vmem:[#allocation1 + $0x10] sm:$0xff pattern:$0x73625140]  ;;  %v318_v8 = vld.sshfl [vmem:[#allocation1 + $0x18] sm:$0xff pattern:$0x73625140] }
  0x5d   :  { %v319_v53 = vld.sshfl [vmem:[#allocation1 + $0x20] sm:$0xff pattern:$0x73625140]  ;;  %v320_v54 = vld.sshfl [vmem:[#allocation1 + $0x28] sm:$0xff pattern:$0x73625140]  ;;  %v129_v13 = vadd.f32 %v128_v2, %v127_v57 }
  0x5e   :  { %v290_v55 = vadd.f32 %v289_v12, %v288_v48  ;;  %v321_v56 = vld.sshfl [vmem:[#allocation1 + $0x30] sm:$0xff pattern:$0x73625140]  ;;  %v322_v9 = vld.sshfl [vmem:[#allocation1 + $0x38] sm:$0xff pattern:$0x73625140] }
  0x5f   :  { %323 = vst [vmem:[#allocation1] ss:$4 sm:$0xff] %v306_v26  ;;  %v349_v58 = vsel %vm108_vm1, %v315_v46, 0.0  ;;  %v350_v10 = vsel %vm108_vm1, %v316_v47, 0.0  ;;  %v352_v24 = vsel %vm108_vm1, %v317_v51, 0.0  ;;  %v136_v63 = vsel %vm108_vm1, %v1090_v21, 0.0 }
  0x60   :  { %v292_v62 = vadd.f32 %v291_v4, %v290_v55  ;;  %324 = vst [vmem:[#allocation1 + $0x20] ss:$4 sm:$0xff] %v307_v50  ;;  %v351_v0 = vadd.f32 %v350_v10, %v349_v58  ;;  %v354_v19 = vsel %vm108_vm1, %v318_v8, 0.0  ;;  %v131_v12 = vadd.f32 %v130_v11, %v129_v13 }
  0x61   :  { %v356_v2 = vsel %vm108_vm1, %v319_v53, 0.0  ;;  %v358_v20 = vsel %vm108_vm1, %v320_v54, 0.0  ;;  %v198_v21 = vsel %vm108_vm1, %v1112_v31, 0.0  ;;  %v197_v4 = vadd.f32 %v196_v43, %v195_v3 }
  0x62   :  { %v294_v38 = vadd.f32 %v293_v18, %v292_v62  ;;  %v353_v15 = vadd.f32 %v352_v24, %v351_v0  ;;  %v133_v16 = vadd.f32 %v132_v23, %v131_v12  ;;  %v360_v29 = vsel %vm108_vm1, %v321_v56, 0.0 }
  0x63   :  { %v362_v11 = vsel %vm108_vm1, %v322_v9, 0.0  ;;  %v200_v18 = vsel %vm108_vm1, %v1114_v32, 0.0  ;;  %v199_v31 = vadd.f32 %v198_v21, %v197_v4  ;;  %v206_v56 = vsel %vm108_vm1, %v1122_v36, 0.0 }
  0x64   :  { %v296_v22 = vadd.f32 %v295_v44, %v294_v38  ;;  %v355_v17 = vadd.f32 %v354_v19, %v353_v15  ;;  %v135_v25 = vadd.f32 %v134_v14, %v133_v16  ;;  %v210_v24 = vsel %vm108_vm1, %v1128_v39, 0.0 }
  0x65   :  { %v201_v51 = vadd.f32 %v200_v18, %v199_v31  ;;  %v212_v36 = vsel %vm108_vm1, %v1130_v40, 0.0  ;;  %v214_v43 = vsel %vm108_vm1, %v1132_v41, 0.0  ;;  %v216_v4 = vsel %vm108_vm1, %v1134_v42, 0.0 }
  0x66   :  { %v298_v6 = vadd.f32 %v297_v7, %v296_v22  ;;  %v325_v45 = vld.sshfl [vmem:[#allocation1] sm:$0xff pattern:$0x73625140]  ;;  %v326_v30 = vld.sshfl [vmem:[#allocation1 + $0x8] sm:$0xff pattern:$0x73625140]  ;;  %v357_v26 = vadd.f32 %v356_v2, %v355_v17  ;;  %v137_v48 = vadd.f32 %v136_v63, %v135_v25 }
  0x67   :  { %v327_v44 = vld.sshfl [vmem:[#allocation1 + $0x10] sm:$0xff pattern:$0x73625140]  ;;  %v328_v46 = vld.sshfl [vmem:[#allocation1 + $0x18] sm:$0xff pattern:$0x73625140]  ;;  %v203_v54 = vadd.f32 %v202_v5, %v201_v51 }
  0x68   :  { %v329_v47 = vld.sshfl [vmem:[#allocation1 + $0x20] sm:$0xff pattern:$0x73625140]  ;;  %v330_v27 = vld.sshfl [vmem:[#allocation1 + $0x28] sm:$0xff pattern:$0x73625140]  ;;  %299 = vadd.xlane.f32.xlu1 %v298_v6  ;;  %v359_v50 = vadd.f32 %v358_v20, %v357_v26  ;;  %v139_v32 = vadd.f32 %v138_v1, %v137_v48 }
  0x69   :  { %v331_v8 = vld.sshfl [vmem:[#allocation1 + $0x30] sm:$0xff pattern:$0x73625140]  ;;  %v332_v52 = vld.sshfl [vmem:[#allocation1 + $0x38] sm:$0xff pattern:$0x73625140] }
  0x6a   :  { %393 = vst [vmem:[#allocation1] ss:$4 sm:$0xff] %v1141_v49  ;;  %v361_v33 = vadd.f32 %v360_v29, %v359_v50  ;;  %v204_v7 = vsel %vm108_vm1, %v1120_v34, 0.0  ;;  %v364_v53 = vsel %vm108_vm1, %v325_v45, 0.0  ;;  %140 = vadd.xlane.f32.xlu0 %v139_v32  ;;  %v366_v9 = vsel %vm108_vm1, %v326_v30, 0.0 }
  0x6b   :  { %395 = vst [vmem:[#allocation1 + $0x20] ss:$4 sm:$0xff] %v1149_v59  ;;  %v205_v57 = vadd.f32 %v204_v7, %v203_v54  ;;  %v208_v49 = vsel %vm108_vm1, %v1124_v37, 0.0  ;;  %v368_v23 = vsel %vm108_vm1, %v327_v44, 0.0  ;;  %v370_v34 = vsel %vm108_vm1, %v328_v46, 0.0 }
  0x6c   :  { %v363_v55 = vadd.f32 %v362_v11, %v361_v33  ;;  %v372_v10 = vsel %vm108_vm1, %v329_v47, 0.0  ;;  %v374_v20 = vsel %vm108_vm1, %v330_v27, 0.0  ;;  %v378_v5 = vsel %vm108_vm1, %v332_v52, 0.0 }
  0x6d   :  { %v207_v59 = vadd.f32 %v206_v56, %v205_v57 }
  0x6e   :  { %v365_v28 = vadd.f32 %v364_v53, %v363_v55 }
  0x6f   :  { %v209_v14 = vadd.f32 %v208_v49, %v207_v59 }
  0x70   :  { %v367_v58 = vadd.f32 %v366_v9, %v365_v28 }
  0x71   :  { %v396_v62 = vld.sshfl [vmem:[#allocation1] sm:$0xff pattern:$0x73625140]  ;;  %v397_v13 = vld.sshfl [vmem:[#allocation1 + $0x8] sm:$0xff pattern:$0x73625140]  ;;  %v211_v35 = vadd.f32 %v210_v24, %v209_v14 }
  0x72   :  { %v398_v0 = vld.sshfl [vmem:[#allocation1 + $0x10] sm:$0xff pattern:$0x73625140]  ;;  %v399_v63 = vld.sshfl [vmem:[#allocation1 + $0x18] sm:$0xff pattern:$0x73625140]  ;;  %v369_v37 = vadd.f32 %v368_v23, %v367_v58 }
  0x73   :  { %v400_v1 = vld.sshfl [vmem:[#allocation1 + $0x20] sm:$0xff pattern:$0x73625140]  ;;  %v401_v19 = vld.sshfl [vmem:[#allocation1 + $0x28] sm:$0xff pattern:$0x73625140]  ;;  %v213_v16 = vadd.f32 %v212_v36, %v211_v35 }
  0x74   :  { %v402_v38 = vld.sshfl [vmem:[#allocation1 + $0x30] sm:$0xff pattern:$0x73625140]  ;;  %v403_v12 = vld.sshfl [vmem:[#allocation1 + $0x38] sm:$0xff pattern:$0x73625140]  ;;  %v371_v15 = vadd.f32 %v370_v34, %v369_v37 }
  0x75   :  { %404 = vst [vmem:[#allocation1] ss:$4 sm:$0xff] %v1153_v60  ;;  %v430_v3 = vsel %vm108_vm1, %v396_v62, 0.0  ;;  %v431_v39 = vsel %vm108_vm1, %v397_v13, 0.0  ;;  %v433_v40 = vsel %vm108_vm1, %v398_v0, 0.0  ;;  %v435_v21 = vsel %vm108_vm1, %v399_v63, 0.0 }
  0x76   :  { %405 = vst [vmem:[#allocation1 + $0x20] ss:$4 sm:$0xff] %v1157_v61  ;;  %v432_v2 = vadd.f32 %v431_v39, %v430_v3  ;;  %v373_v22 = vadd.f32 %v372_v10, %v371_v15  ;;  %v376_v60 = vsel %vm108_vm1, %v331_v8, 0.0  ;;  %v437_v29 = vsel %vm108_vm1, %v400_v1, 0.0  ;;  %v222_v36 = vld [vmem:[#allocation4] sm:$0x3] }
  0x77   :  { %v215_v61 = vadd.f32 %v214_v43, %v213_v16  ;;  %v439_v6 = vsel %vm108_vm1, %v401_v19, 0.0  ;;  %v441_v25 = vsel %vm108_vm1, %v402_v38, 0.0  ;;  %v443_v42 = vsel %vm108_vm1, %v403_v12, 0.0  ;;  %v66_v14 = vld [vmem:[#allocation2] sm:$0x3] }
  0x78   :  { %v434_v17 = vadd.f32 %v433_v40, %v432_v2  ;;  %v375_v11 = vadd.f32 %v374_v20, %v373_v22  ;;  %v145_v37 = vld [vmem:[#allocation3] sm:$0x3]  ;;  %v303_v1 = vld [vmem:[#allocation5] sm:$0x3]  ;;  %v384_v15 = vld [vmem:[#allocation6] sm:$0x3] }
  0x79   :  { %v217_v45 = vadd.f32 %v216_v4, %v215_v61 }
  0x7a   :  { %v436_v18 = vadd.f32 %v435_v21, %v434_v17  ;;  %v377_v41 = vadd.f32 %v376_v60, %v375_v11 }
  0x7b   :  { %218 = vadd.xlane.f32.xlu0 %v217_v45 }
  0x7c   :  { %v438_v30 = vadd.f32 %v437_v29, %v436_v18  ;;  %v379_v26 = vadd.f32 %v378_v5, %v377_v41  ;;  %v406_v31 = vld.sshfl [vmem:[#allocation1] sm:$0xff pattern:$0x73625140]  ;;  %v407_v46 = vld.sshfl [vmem:[#allocation1 + $0x8] sm:$0xff pattern:$0x73625140] }
  0x7d   :  { %v445_v27 = vsel %vm108_vm1, %v406_v31, 0.0  ;;  %v408_v48 = vld.sshfl [vmem:[#allocation1 + $0x10] sm:$0xff pattern:$0x73625140]  ;;  %v447_v51 = vsel %vm108_vm1, %v407_v46, 0.0 }
  0x7e   :  { %v440_v44 = vadd.f32 %v439_v6, %v438_v30  ;;  %380 = vadd.xlane.f32.xlu1 %v379_v26  ;;  %v409_v8 = vld.sshfl [vmem:[#allocation1 + $0x18] sm:$0xff pattern:$0x73625140]  ;;  %v449_v32 = vsel %vm108_vm1, %v408_v48, 0.0 }
  0x7f   :  { %v410_v33 = vld.sshfl [vmem:[#allocation1 + $0x20] sm:$0xff pattern:$0x73625140]  ;;  %v451_v53 = vsel %vm108_vm1, %v409_v8, 0.0 }
  0x80   :  { %v442_v47 = vadd.f32 %v441_v25, %v440_v44  ;;  %v411_v54 = vld.sshfl [vmem:[#allocation1 + $0x28] sm:$0xff pattern:$0x73625140]  ;;  %v453_v56 = vsel %vm108_vm1, %v410_v33, 0.0 }
  0x81   :  { %v412_v9 = vld.sshfl [vmem:[#allocation1 + $0x30] sm:$0xff pattern:$0x73625140]  ;;  %v455_v28 = vsel %vm108_vm1, %v411_v54, 0.0 }
  0x82   :  { %v444_v50 = vadd.f32 %v443_v42, %v442_v47  ;;  %v413_v49 = vld.sshfl [vmem:[#allocation1 + $0x38] sm:$0xff pattern:$0x73625140]  ;;  %v457_v34 = vsel %vm108_vm1, %v412_v9, 0.0 }
  0x83   :  { %v459_v58 = vsel %vm108_vm1, %v413_v49, 0.0 }
  0x84   :  { %v446_v52 = vadd.f32 %v445_v27, %v444_v50 }
  0x86   :  { %v448_v7 = vadd.f32 %v447_v51, %v446_v52 }
  0x88   :  { %v450_v55 = vadd.f32 %v449_v32, %v448_v7 }
  0x8a   :  { %v452_v57 = vadd.f32 %v451_v53, %v450_v55 }
  0x8c   :  { %v454_v23 = vadd.f32 %v453_v56, %v452_v57 }
  0x8e   :  { %v456_v59 = vadd.f32 %v455_v28, %v454_v23 }
  0x90   :  { %v458_v10 = vadd.f32 %v457_v34, %v456_v59 }
  0x92   :  { %v460_v24 = vadd.f32 %v459_v58, %v458_v10 }
  0x94   :  { %461 = vadd.xlane.f32.xlu2 %v460_v24 }
  0xdb   :  { %v300_v62 = vpop.xlane.xlu1 %299 }
  0xdc   :  { %v301_v13 = vadd.f32 %v300_v62, %v222_v36 }
  0xdd   :  { %v141_v0 = vpop.xlane.xlu0 %140 }
  0xde   :  { %302 = vst.msk [vmem:[#allocation4] sm:$0x3] %vm1755_vm0, %v301_v13  ;;  %v142_v63 = vadd.f32 %v141_v0, %v66_v14 }
  0xe0   :  { %144 = vst.msk [vmem:[#allocation2] sm:$0x3] %vm1755_vm0, %v142_v63 }
  0xee   :  { %v219_v19 = vpop.xlane.xlu0 %218 }
  0xef   :  { %v220_v35 = vadd.f32 %v219_v19, %v145_v37 }
  0xf1   :  { %v381_v38 = vpop.xlane.xlu1 %380  ;;  %221 = vst.msk [vmem:[#allocation3] sm:$0x3] %vm1755_vm0, %v220_v35 }
  0xf2   :  { %v382_v12 = vadd.f32 %v381_v38, %v303_v1 }
  0xf4   :  { %383 = vst.msk [vmem:[#allocation5] sm:$0x3] %vm1755_vm0, %v382_v12 }
 0x107   :  { %v462_v3 = vpop.xlane.xlu2 %461 }
 0x108   :  { %v463_v39 = vadd.f32 %v462_v3, %v384_v15 }
 0x10a   :  { %464 = vst.msk [vmem:[#allocation6] sm:$0x3] %vm1755_vm0, %v463_v39 }
 0x10b PF:  { %p948_p1 = scmp.ge.s32.totalorder %s1751_s0, 2048 }
 0x10d   :  { %468 = sbr.rel (%p948_p1) target bundleno = 482 (0x1e2), region = 29 }
 0x112   :  { %v471_v40 = vlaneseq  ;;  %v505_v2 = vld [vmem:[#allocation9] sm:$0xff]  ;;  %v506_v20 = vld [vmem:[#allocation9 + $0x8] sm:$0xff]  ;;  %v1301_v17 = vstv %s1751_s0  ;;  %vm628_vm2 = vcmask 1041408   ;;  %v507_v6 = vld [vmem:[#allocation9 + $0x10] sm:$0xff] }
 0x113   :  { %513 = vst [vmem:[#allocation1] ss:$4 sm:$0xff] %v505_v2  ;;  %v508_v41 = vld [vmem:[#allocation9 + $0x18] sm:$0xff]  ;;  %v566_v58 = vld [vmem:[#allocation11] sm:$0xff]  ;;  %v567_v14 = vld [vmem:[#allocation11 + $0x8] sm:$0xff] }
 0x114   :  { %v1287_v43 = vand.u32 127, %v471_v40  ;;  %515 = vst [vmem:[#allocation1 + $0x20] ss:$4 sm:$0xff] %v506_v20 }
 0x116   :  { %v1290_v21 = vadd.s32 128, %v1287_v43  ;;  %v1293_v22 = vadd.s32 256, %v1287_v43  ;;  %v1296_v16 = vadd.s32 384, %v1287_v43  ;;  %v1304_v60 = vadd.s32 512, %v1287_v43 }
 0x117   :  { %v1307_v4 = vadd.s32 640, %v1287_v43  ;;  %v1310_v29 = vadd.s32 768, %v1287_v43  ;;  %v1313_v11 = vadd.s32 896, %v1287_v43  ;;  %v1316_v61 = vadd.s32 1024, %v1287_v43 }
 0x118   :  { %v1319_v18 = vadd.s32 1152, %v1287_v43  ;;  %v1322_v5 = vadd.s32 1280, %v1287_v43  ;;  %vm489_vm3 = vcmp.lt.s32.totalorder %v1287_v43, %v1301_v17  ;;  %vm490_vm4 = vcmp.lt.s32.totalorder %v1290_v21, %v1301_v17 }
 0x119   :  { %vm491_vm5 = vcmp.lt.s32.totalorder %v1293_v22, %v1301_v17  ;;  %vm492_vm6 = vcmp.lt.s32.totalorder %v1296_v16, %v1301_v17  ;;  %v1353_v51 = vadd.s32 1408, %v1287_v43  ;;  %vm493_vm7 = vcmp.lt.s32.totalorder %v1304_v60, %v1301_v17 }
 0x11a   :  { %v516_v45 = vld.sshfl [vmem:[#allocation1] sm:$0xff pattern:$0x73625140]  ;;  %v517_v30 = vld.sshfl [vmem:[#allocation1 + $0x8] sm:$0xff pattern:$0x73625140]  ;;  %vm494_vm8 = vcmp.lt.s32.totalorder %v1307_v4, %v1301_v17  ;;  %vm495_vm9 = vcmp.lt.s32.totalorder %v1310_v29, %v1301_v17  ;;  %vm496_vm10 = vcmp.lt.s32.totalorder %v1313_v11, %v1301_v17  ;;  %vm497_vm11 = vcmp.lt.s32.totalorder %v1316_v61, %v1301_v17 }
 0x11b   :  { %v518_v25 = vld.sshfl [vmem:[#allocation1 + $0x10] sm:$0xff pattern:$0x73625140]  ;;  %v519_v26 = vld.sshfl [vmem:[#allocation1 + $0x18] sm:$0xff pattern:$0x73625140]  ;;  %vm498_vm12 = vcmp.lt.s32.totalorder %v1319_v18, %v1301_v17  ;;  %vm1756_vm13 = vcmp.lt.s32.totalorder %v1322_v5, %v1301_v17  ;;  %vm500_vm14 = vcmp.lt.s32.totalorder %v1353_v51, %v1301_v17 }
 0x11c   :  { %v520_v31 = vld.sshfl [vmem:[#allocation1 + $0x20] sm:$0xff pattern:$0x73625140]  ;;  %v521_v44 = vld.sshfl [vmem:[#allocation1 + $0x28] sm:$0xff pattern:$0x73625140] }
 0x11d   :  { %v522_v42 = vld.sshfl [vmem:[#allocation1 + $0x30] sm:$0xff pattern:$0x73625140]  ;;  %v523_v46 = vld.sshfl [vmem:[#allocation1 + $0x38] sm:$0xff pattern:$0x73625140] }
 0x11e   :  { %524 = vst [vmem:[#allocation1] ss:$4 sm:$0xff] %v507_v6  ;;  %v1335_v47 = vsel %vm489_vm3, %v516_v45, 0.0  ;;  %v1340_v27 = vsel %vm490_vm4, %v517_v30, 0.0  ;;  %v1345_v48 = vsel %vm491_vm5, %v518_v25, 0.0  ;;  %v1350_v50 = vsel %vm492_vm6, %v519_v26, 0.0 }
 0x11f   :  { %525 = vst [vmem:[#allocation1 + $0x20] ss:$4 sm:$0xff] %v508_v41  ;;  %v702_v8 = vmul.f32 %v1335_v47, %v1335_v47  ;;  %v703_v52 = vmul.f32 %v1340_v27, %v1340_v27  ;;  %v704_v32 = vmul.f32 %v1345_v48, %v1345_v48  ;;  %v705_v33 = vmul.f32 %v1350_v50, %v1350_v50 }
 0x120   :  { %v1370_v7 = vadd.s32 1536, %v1287_v43  ;;  %v1373_v53 = vadd.s32 1664, %v1287_v43  ;;  %v1376_v54 = vadd.s32 1792, %v1287_v43  ;;  %v1381_v55 = vadd.s32 1920, %v1287_v43 }
 0x121   :  { %v718_v56 = vsel %vm628_vm2, %v702_v8, 0.0  ;;  %v719_v9 = vsel %vm628_vm2, %v703_v52, 0.0  ;;  %v721_v57 = vsel %vm628_vm2, %v704_v32, 0.0  ;;  %v1389_v28 = vsel %vm493_vm7, %v520_v31, 0.0 }
 0x122   :  { %v1394_v49 = vsel %vm494_vm8, %v521_v44, 0.0  ;;  %v1399_v23 = vsel %vm495_vm9, %v522_v42, 0.0  ;;  %v720_v34 = vadd.f32 %v719_v9, %v718_v56  ;;  %v1404_v59 = vsel %vm496_vm10, %v523_v46, 0.0 }
 0x123   :  { %v723_v10 = vsel %vm628_vm2, %v705_v33, 0.0  ;;  %v629_v24 = vsel %vm628_vm2, %v1335_v47, 0.0  ;;  %v630_v36 = vsel %vm628_vm2, %v1340_v27, 0.0  ;;  %v706_v1 = vmul.f32 %v1389_v28, %v1389_v28 }
 0x124   :  { %v722_v0 = vadd.f32 %v721_v57, %v720_v34  ;;  %v707_v15 = vmul.f32 %v1394_v49, %v1394_v49  ;;  %v631_v3 = vadd.f32 %v630_v36, %v629_v24  ;;  %v708_v40 = vmul.f32 %v1399_v23, %v1399_v23 }
 0x125   :  { %v526_v62 = vld.sshfl [vmem:[#allocation1] sm:$0xff pattern:$0x73625140]  ;;  %v527_v13 = vld.sshfl [vmem:[#allocation1 + $0x8] sm:$0xff pattern:$0x73625140]  ;;  %v709_v45 = vmul.f32 %v1404_v59, %v1404_v59  ;;  %vm501_vm15 = vcmp.lt.s32.totalorder %v1370_v7, %v1301_v17  ;;  %vm502_vm1 = vcmp.lt.s32.totalorder %v1373_v53, %v1301_v17  ;;  %vm503_vm0 = vcmp.lt.s32.totalorder %v1376_v54, %v1301_v17 }
 0x126   :  { %v528_v63 = vld.sshfl [vmem:[#allocation1 + $0x10] sm:$0xff pattern:$0x73625140]  ;;  %v529_v37 = vld.sshfl [vmem:[#allocation1 + $0x18] sm:$0xff pattern:$0x73625140]  ;;  %v724_v2 = vadd.f32 %v723_v10, %v722_v0 }
 0x127   :  { %v530_v19 = vld.sshfl [vmem:[#allocation1 + $0x20] sm:$0xff pattern:$0x73625140]  ;;  %v531_v35 = vld.sshfl [vmem:[#allocation1 + $0x28] sm:$0xff pattern:$0x73625140] }
 0x128   :  { %v532_v38 = vld.sshfl [vmem:[#allocation1 + $0x30] sm:$0xff pattern:$0x73625140]  ;;  %v533_v12 = vld.sshfl [vmem:[#allocation1 + $0x38] sm:$0xff pattern:$0x73625140] }
 0x129   :  { %v1424_v39 = vsel %vm497_vm11, %v526_v62, 0.0  ;;  %574 = vst [vmem:[#allocation1] ss:$4 sm:$0xff] %v566_v58  ;;  %v632_v20 = vsel %vm628_vm2, %v1345_v48, 0.0  ;;  %v1433_v6 = vsel %vm498_vm12, %v527_v13, 0.0  ;;  %v1438_v41 = vsel %vm1756_vm13, %v528_v63, 0.0 }
 0x12a   :  { %576 = vst [vmem:[#allocation1 + $0x20] ss:$4 sm:$0xff] %v567_v14  ;;  %v725_v30 = vsel %vm628_vm2, %v706_v1, 0.0  ;;  %v710_v25 = vmul.f32 %v1424_v39, %v1424_v39  ;;  %v727_v26 = vsel %vm628_vm2, %v707_v15, 0.0  ;;  %v633_v31 = vadd.f32 %v632_v20, %v631_v3 }
 0x12b   :  { %vm504_vm13 = vcmp.lt.s32.totalorder %v1381_v55, %v1301_v17  ;;  %v711_v44 = vmul.f32 %v1433_v6, %v1433_v6  ;;  %v712_v42 = vmul.f32 %v1438_v41, %v1438_v41  ;;  %v726_v46 = vadd.f32 %v725_v30, %v724_v2 }
 0x12c   :  { %v1463_v8 = vsel %vm500_vm14, %v529_v37, 0.0  ;;  %v1468_v52 = vsel %vm501_vm15, %v530_v19, 0.0  ;;  %v729_v32 = vsel %vm628_vm2, %v708_v40, 0.0  ;;  %v731_v33 = vsel %vm628_vm2, %v709_v45, 0.0  ;;  %v568_v37 = vld [vmem:[#allocation11 + $0x10] sm:$0xff] }
 0x12d   :  { %v1475_v56 = vsel %vm502_vm1, %v531_v35, 0.0  ;;  %v728_v9 = vadd.f32 %v727_v26, %v726_v46  ;;  %v634_v57 = vsel %vm628_vm2, %v1350_v50, 0.0  ;;  %v636_v34 = vsel %vm628_vm2, %v1389_v28, 0.0  ;;  %v569_v35 = vld [vmem:[#allocation11 + $0x18] sm:$0xff] }
 0x12e   :  { %v1484_v58 = vsel %vm503_vm0, %v532_v38, 0.0  ;;  %v1489_v10 = vsel %vm504_vm13, %v533_v12, 0.0  ;;  %v733_v24 = vsel %vm628_vm2, %v710_v25, 0.0  ;;  %v635_v36 = vadd.f32 %v634_v57, %v633_v31 }
 0x12f   :  { %v730_v13 = vadd.f32 %v729_v32, %v728_v9  ;;  %v735_v14 = vsel %vm628_vm2, %v711_v44, 0.0  ;;  %v737_v0 = vsel %vm628_vm2, %v712_v42, 0.0  ;;  %v638_v63 = vsel %vm628_vm2, %v1394_v49, 0.0 }
 0x130   :  { %v577_v62 = vld.sshfl [vmem:[#allocation1] sm:$0xff pattern:$0x73625140]  ;;  %v713_v1 = vmul.f32 %v1463_v8, %v1463_v8  ;;  %v637_v19 = vadd.f32 %v636_v34, %v635_v36  ;;  %v578_v38 = vld.sshfl [vmem:[#allocation1 + $0x8] sm:$0xff pattern:$0x73625140]  ;;  %v714_v26 = vmul.f32 %v1468_v52, %v1468_v52  ;;  %v715_v9 = vmul.f32 %v1475_v56, %v1475_v56 }
 0x131   :  { %v579_v12 = vld.sshfl [vmem:[#allocation1 + $0x10] sm:$0xff pattern:$0x73625140]  ;;  %v732_v15 = vadd.f32 %v731_v33, %v730_v13  ;;  %v640_v3 = vsel %vm628_vm2, %v1399_v23, 0.0  ;;  %v642_v40 = vsel %vm628_vm2, %v1404_v59, 0.0  ;;  %v1505_v20 = vsel %vm489_vm3, %v577_v62, 0.0 }
 0x132   :  { %v580_v2 = vld.sshfl [vmem:[#allocation1 + $0x18] sm:$0xff pattern:$0x73625140]  ;;  %v639_v45 = vadd.f32 %v638_v63, %v637_v19  ;;  %v581_v30 = vld.sshfl [vmem:[#allocation1 + $0x20] sm:$0xff pattern:$0x73625140]  ;;  %v806_v33 = vmul.f32 %v1505_v20, %v1335_v47  ;;  %v716_v62 = vmul.f32 %v1484_v58, %v1484_v58  ;;  %v717_v13 = vmul.f32 %v1489_v10, %v1489_v10 }
 0x133   :  { %v582_v25 = vld.sshfl [vmem:[#allocation1 + $0x28] sm:$0xff pattern:$0x73625140]  ;;  %v734_v31 = vadd.f32 %v733_v24, %v732_v15  ;;  %v583_v44 = vld.sshfl [vmem:[#allocation1 + $0x30] sm:$0xff pattern:$0x73625140]  ;;  %vm1757_vm3 = vcmp.lt.s32.totalorder %v1322_v5, %v1301_v17 }
 0x134   :  { %v584_v42 = vld.sshfl [vmem:[#allocation1 + $0x38] sm:$0xff pattern:$0x73625140]  ;;  %v641_v46 = vadd.f32 %v640_v3, %v639_v45  ;;  %585 = vst [vmem:[#allocation1] ss:$4 sm:$0xff] %v568_v37  ;;  %v1512_v32 = vsel %vm490_vm4, %v578_v38, 0.0 }
 0x135   :  { %v1517_v43 = vsel %vm491_vm5, %v579_v12, 0.0  ;;  %v736_v57 = vadd.f32 %v735_v14, %v734_v31  ;;  %v739_v34 = vsel %vm628_vm2, %v713_v1, 0.0  ;;  %v644_v24 = vsel %vm628_vm2, %v1424_v39, 0.0  ;;  %586 = vst [vmem:[#allocation1 + $0x20] ss:$4 sm:$0xff] %v569_v35 }
 0x136   :  { %v643_v21 = vadd.f32 %v642_v40, %v641_v46  ;;  %v1529_v22 = vsel %vm492_vm6, %v580_v2, 0.0  ;;  %v807_v36 = vmul.f32 %v1512_v32, %v1340_v27  ;;  %v808_v47 = vmul.f32 %v1517_v43, %v1345_v48 }
 0x137   :  { %v738_v14 = vadd.f32 %v737_v0, %v736_v57  ;;  %v646_v63 = vsel %vm628_vm2, %v1433_v6, 0.0  ;;  %v741_v16 = vsel %vm628_vm2, %v714_v26, 0.0  ;;  %v648_v1 = vsel %vm628_vm2, %v1438_v41, 0.0 }
 0x138   :  { %v645_v37 = vadd.f32 %v644_v24, %v643_v21  ;;  %v822_v27 = vsel %vm628_vm2, %v806_v33, 0.0  ;;  %v809_v48 = vmul.f32 %v1529_v22, %v1350_v50  ;;  %v823_v35 = vsel %vm628_vm2, %v807_v36, 0.0 }
 0x139   :  { %v740_v19 = vadd.f32 %v739_v34, %v738_v14  ;;  %v825_v38 = vsel %vm628_vm2, %v808_v47, 0.0  ;;  %v743_v0 = vsel %vm628_vm2, %v715_v9, 0.0  ;;  %v1553_v15 = vsel %vm493_vm7, %v581_v30, 0.0 }
 0x13a   :  { %v647_v12 = vadd.f32 %v646_v63, %v645_v37  ;;  %v824_v3 = vadd.f32 %v823_v35, %v822_v27  ;;  %v650_v2 = vsel %vm628_vm2, %v1463_v8, 0.0  ;;  %v745_v45 = vsel %vm628_vm2, %v716_v62, 0.0 }
 0x13b   :  { %v742_v40 = vadd.f32 %v741_v16, %v740_v19  ;;  %v1561_v26 = vsel %vm494_vm8, %v582_v25, 0.0  ;;  %v652_v60 = vsel %vm628_vm2, %v1468_v52, 0.0  ;;  %v810_v30 = vmul.f32 %v1553_v15, %v1389_v28  ;;  %v587_v24 = vld.sshfl [vmem:[#allocation1] sm:$0xff pattern:$0x73625140] }
 0x13c   :  { %v649_v50 = vadd.f32 %v648_v1, %v647_v12  ;;  %v826_v31 = vadd.f32 %v825_v38, %v824_v3  ;;  %v827_v33 = vsel %vm628_vm2, %v809_v48, 0.0  ;;  %v747_v9 = vsel %vm628_vm2, %v717_v13, 0.0 }
 0x13d   :  { %v744_v46 = vadd.f32 %v743_v0, %v742_v40  ;;  %v1572_v34 = vsel %vm495_vm9, %v583_v44, 0.0  ;;  %v654_v25 = vsel %vm628_vm2, %v1475_v56, 0.0  ;;  %v811_v21 = vmul.f32 %v1561_v26, %v1394_v49  ;;  %v588_v44 = vld.sshfl [vmem:[#allocation1 + $0x8] sm:$0xff pattern:$0x73625140] }
 0x13e   :  { %v651_v57 = vadd.f32 %v650_v2, %v649_v50  ;;  %v1581_v28 = vsel %vm496_vm10, %v584_v42, 0.0  ;;  %v828_v47 = vadd.f32 %v827_v33, %v826_v31  ;;  %v656_v29 = vsel %vm628_vm2, %v1484_v58, 0.0  ;;  %v589_v42 = vld.sshfl [vmem:[#allocation1 + $0x10] sm:$0xff pattern:$0x73625140] }
 0x13f   :  { %v746_v4 = vadd.f32 %v745_v45, %v744_v46  ;;  %v812_v13 = vmul.f32 %v1572_v34, %v1399_v23  ;;  %v829_v14 = vsel %vm628_vm2, %v810_v30, 0.0  ;;  %v1591_v49 = vsel %vm497_vm11, %v587_v24, 0.0  ;;  %v590_v23 = vld.sshfl [vmem:[#allocation1 + $0x18] sm:$0xff pattern:$0x73625140] }
 0x140   :  { %v653_v36 = vadd.f32 %v652_v60, %v651_v57  ;;  %v658_v11 = vsel %vm628_vm2, %v1489_v10, 0.0  ;;  %v813_v16 = vmul.f32 %v1581_v28, %v1404_v59  ;;  %v831_v37 = vsel %vm628_vm2, %v811_v21, 0.0  ;;  %v591_v0 = vld.sshfl [vmem:[#allocation1 + $0x20] sm:$0xff pattern:$0x73625140] }
 0x141   :  { %v748_v62 = vadd.f32 %v747_v9, %v746_v4  ;;  %v1601_v27 = vsel %vm498_vm12, %v588_v44, 0.0  ;;  %v830_v61 = vadd.f32 %v829_v14, %v828_v47  ;;  %v814_v19 = vmul.f32 %v1591_v49, %v1424_v39  ;;  %v592_v45 = vld.sshfl [vmem:[#allocation1 + $0x28] sm:$0xff pattern:$0x73625140] }
 0x142   :  { %v655_v63 = vadd.f32 %v654_v25, %v653_v36  ;;  %v833_v48 = vsel %vm628_vm2, %v812_v13, 0.0  ;;  %v754_v35 = vmul.f32 %v1505_v20, %v1505_v20  ;;  %v755_v59 = vmul.f32 %v1512_v32, %v1512_v32  ;;  %v593_v30 = vld.sshfl [vmem:[#allocation1 + $0x30] sm:$0xff pattern:$0x73625140] }
 0x143   :  { %749 = vadd.xlane.f32.xlu1 %v748_v62  ;;  %v1613_v18 = vsel %vm1757_vm3, %v589_v42, 0.0  ;;  %v832_v12 = vadd.f32 %v831_v37, %v830_v61  ;;  %v756_v3 = vmul.f32 %v1517_v43, %v1517_v43  ;;  %v1620_v39 = vsel %vm500_vm14, %v590_v23, 0.0  ;;  %v594_v62 = vld.sshfl [vmem:[#allocation1 + $0x38] sm:$0xff pattern:$0x73625140] }
 0x144   :  { %v657_v1 = vadd.f32 %v656_v29, %v655_v63  ;;  %v815_v40 = vmul.f32 %v1601_v27, %v1433_v6  ;;  %v835_v2 = vsel %vm628_vm2, %v813_v16, 0.0  ;;  %v757_v5 = vmul.f32 %v1529_v22, %v1529_v22 }
 0x145   :  { %v834_v50 = vadd.f32 %v833_v48, %v832_v12  ;;  %v758_v31 = vmul.f32 %v1553_v15, %v1553_v15  ;;  %v1632_v51 = vsel %vm501_vm15, %v591_v0, 0.0  ;;  %v816_v46 = vmul.f32 %v1613_v18, %v1438_v41 }
 0x146   :  { %v659_v38 = vadd.f32 %v658_v11, %v657_v1  ;;  %v837_v6 = vsel %vm628_vm2, %v814_v19, 0.0  ;;  %v770_v60 = vsel %vm628_vm2, %v754_v35, 0.0  ;;  %v817_v33 = vmul.f32 %v1620_v39, %v1463_v8 }
 0x147   :  { %v836_v9 = vadd.f32 %v835_v2, %v834_v50  ;;  %v771_v57 = vsel %vm628_vm2, %v755_v59, 0.0  ;;  %v773_v4 = vsel %vm628_vm2, %v756_v3, 0.0  ;;  %v1645_v7 = vsel %vm502_vm1, %v592_v45, 0.0 }
 0x148   :  { %660 = vadd.xlane.f32.xlu0 %v659_v38  ;;  %v839_v41 = vsel %vm628_vm2, %v815_v40, 0.0  ;;  %v759_v25 = vmul.f32 %v1561_v26, %v1561_v26  ;;  %v772_v24 = vadd.f32 %v771_v57, %v770_v60  ;;  %v760_v8 = vmul.f32 %v1572_v34, %v1572_v34 }
 0x149   :  { %v838_v21 = vadd.f32 %v837_v6, %v836_v9  ;;  %v761_v36 = vmul.f32 %v1581_v28, %v1581_v28  ;;  %v775_v47 = vsel %vm628_vm2, %v757_v5, 0.0  ;;  %v1658_v53 = vsel %vm503_vm0, %v593_v30, 0.0 }
 0x14a   :  { %v818_v29 = vmul.f32 %v1632_v51, %v1468_v52  ;;  %v841_v44 = vsel %vm628_vm2, %v816_v46, 0.0  ;;  %v774_v13 = vadd.f32 %v773_v4, %v772_v24  ;;  %v819_v14 = vmul.f32 %v1645_v7, %v1475_v56 }
 0x14b   :  { %v840_v63 = vadd.f32 %v839_v41, %v838_v21  ;;  %v843_v11 = vsel %vm628_vm2, %v817_v33, 0.0  ;;  %v777_v42 = vsel %vm628_vm2, %v758_v31, 0.0  ;;  %v666_v54 = vsel %vm628_vm2, %v1505_v20, 0.0 }
 0x14c   :  { %v776_v16 = vadd.f32 %v775_v47, %v774_v13  ;;  %v667_v37 = vsel %vm628_vm2, %v1512_v32, 0.0  ;;  %v669_v52 = vsel %vm628_vm2, %v1517_v43, 0.0  ;;  %v1676_v1 = vsel %vm504_vm13, %v594_v62, 0.0 }
 0x14d   :  { %v842_v56 = vadd.f32 %v841_v44, %v840_v63  ;;  %v779_v23 = vsel %vm628_vm2, %v759_v25, 0.0  ;;  %v668_v61 = vadd.f32 %v667_v37, %v666_v54  ;;  %v820_v19 = vmul.f32 %v1658_v53, %v1484_v58 }
 0x14e   :  { %v845_v20 = vsel %vm628_vm2, %v818_v29, 0.0  ;;  %v778_v48 = vadd.f32 %v777_v42, %v776_v16  ;;  %v671_v32 = vsel %vm628_vm2, %v1529_v22, 0.0  ;;  %v762_v43 = vmul.f32 %v1591_v49, %v1591_v49 }
 0x14f   :  { %v844_v35 = vadd.f32 %v843_v11, %v842_v56  ;;  %v781_v17 = vsel %vm628_vm2, %v760_v8, 0.0  ;;  %v670_v55 = vadd.f32 %v669_v52, %v668_v61  ;;  %v821_v59 = vmul.f32 %v1676_v1, %v1489_v10 }
 0x150   :  { %v847_v38 = vsel %vm628_vm2, %v819_v14, 0.0  ;;  %v780_v0 = vadd.f32 %v779_v23, %v778_v48  ;;  %v673_v58 = vsel %vm628_vm2, %v1553_v15, 0.0  ;;  %v763_v22 = vmul.f32 %v1601_v27, %v1601_v27 }
 0x151   :  { %v846_v12 = vadd.f32 %v845_v20, %v844_v35  ;;  %v783_v3 = vsel %vm628_vm2, %v761_v36, 0.0  ;;  %v672_v40 = vadd.f32 %v671_v32, %v670_v55  ;;  %v849_v2 = vsel %vm628_vm2, %v820_v19, 0.0 }
 0x152   :  { %v782_v45 = vadd.f32 %v781_v17, %v780_v0  ;;  %v675_v50 = vsel %vm628_vm2, %v1561_v26, 0.0  ;;  %v764_v5 = vmul.f32 %v1613_v18, %v1613_v18  ;;  %v785_v31 = vsel %vm628_vm2, %v762_v43, 0.0  ;;  %v627_v0 = vld [vmem:[#allocation2] sm:$0x3] }
 0x153   :  { %v848_v10 = vadd.f32 %v847_v38, %v846_v12  ;;  %v674_v15 = vadd.f32 %v673_v58, %v672_v40  ;;  %v851_v46 = vsel %vm628_vm2, %v821_v59, 0.0  ;;  %v677_v60 = vsel %vm628_vm2, %v1572_v34, 0.0  ;;  %v805_v12 = vld [vmem:[#allocation6] sm:$0x3] }
 0x154   :  { %v784_v6 = vadd.f32 %v783_v3, %v782_v45  ;;  %v765_v33 = vmul.f32 %v1620_v39, %v1620_v39  ;;  %v787_v9 = vsel %vm628_vm2, %v763_v22, 0.0  ;;  %v679_v4 = vsel %vm628_vm2, %v1581_v28, 0.0  ;;  %v753_v3 = vld [vmem:[#allocation5] sm:$0x3] }
 0x155   :  { %v850_v30 = vadd.f32 %v849_v2, %v848_v10  ;;  %v676_v26 = vadd.f32 %v675_v50, %v674_v15  ;;  %v766_v25 = vmul.f32 %v1632_v51, %v1632_v51  ;;  %v789_v24 = vsel %vm628_vm2, %v764_v5, 0.0  ;;  %v665_v2 = vld [vmem:[#allocation3] sm:$0x3] }
 0x156   :  { %v786_v57 = vadd.f32 %v785_v31, %v784_v6  ;;  %v681_v34 = vsel %vm628_vm2, %v1591_v49, 0.0  ;;  %v767_v36 = vmul.f32 %v1645_v7, %v1645_v7  ;;  %v791_v47 = vsel %vm628_vm2, %v765_v33, 0.0 }
 0x157   :  { %v852_v41 = vadd.f32 %v851_v46, %v850_v30  ;;  %v678_v21 = vadd.f32 %v677_v60, %v676_v26  ;;  %v683_v28 = vsel %vm628_vm2, %v1601_v27, 0.0  ;;  %v768_v44 = vmul.f32 %v1658_v53, %v1658_v53 }
 0x158   :  { %v788_v8 = vadd.f32 %v787_v9, %v786_v57  ;;  %v793_v13 = vsel %vm628_vm2, %v766_v25, 0.0  ;;  %v685_v49 = vsel %vm628_vm2, %v1613_v18, 0.0  ;;  %v769_v11 = vmul.f32 %v1676_v1, %v1676_v1 }
 0x159   :  { %853 = vadd.xlane.f32.xlu2 %v852_v41  ;;  %v680_v62 = vadd.f32 %v679_v4, %v678_v21  ;;  %v795_v42 = vsel %vm628_vm2, %v767_v36, 0.0  ;;  %v687_v27 = vsel %vm628_vm2, %v1620_v39, 0.0  ;;  %v797_v37 = vsel %vm628_vm2, %v768_v44, 0.0 }
 0x15a   :  { %v790_v29 = vadd.f32 %v789_v24, %v788_v8  ;;  %v689_v23 = vsel %vm628_vm2, %v1632_v51, 0.0  ;;  %v799_v61 = vsel %vm628_vm2, %v769_v11, 0.0  ;;  %v691_v20 = vsel %vm628_vm2, %v1645_v7, 0.0  ;;  %v701_v51 = vld [vmem:[#allocation4] sm:$0x3] }
 0x15b   :  { %v682_v14 = vadd.f32 %v681_v34, %v680_v62  ;;  %v693_v35 = vsel %vm628_vm2, %v1658_v53, 0.0  ;;  %v695_v43 = vsel %vm628_vm2, %v1676_v1, 0.0  ;;  %vm1758_vm0 = vcmask 1024  }
 0x15c   :  { %v792_v63 = vadd.f32 %v791_v47, %v790_v29  ;;  %vm1759_vm4 = vmmov %vm1758_vm0 }
 0x15d   :  { %v684_v16 = vadd.f32 %v683_v28, %v682_v14  ;;  %vm1760_vm5 = vmmov %vm1758_vm0 }
 0x15e   :  { %v794_v54 = vadd.f32 %v793_v13, %v792_v63  ;;  %vm1761_vm2 = vmmov %vm1758_vm0 }
 0x15f   :  { %v686_v52 = vadd.f32 %v685_v49, %v684_v16  ;;  %vm1762_vm6 = vmmov %vm1758_vm0 }
 0x160   :  { %v796_v56 = vadd.f32 %v795_v42, %v794_v54 }
 0x161   :  { %v688_v18 = vadd.f32 %v687_v27, %v686_v52 }
 0x162   :  { %v798_v19 = vadd.f32 %v797_v37, %v796_v56 }
 0x163   :  { %v690_v48 = vadd.f32 %v689_v23, %v688_v18 }
 0x164   :  { %v800_v32 = vadd.f32 %v799_v61, %v798_v19 }
 0x165   :  { %v692_v39 = vadd.f32 %v691_v20, %v690_v48 }
 0x166   :  { %801 = vadd.xlane.f32.xlu1 %v800_v32 }
 0x167   :  { %v694_v17 = vadd.f32 %v693_v35, %v692_v39 }
 0x169   :  { %v696_v55 = vadd.f32 %v695_v43, %v694_v17 }
 0x16b   :  { %697 = vadd.xlane.f32.xlu0 %v696_v55 }
 0x1b6   :  { %v750_v59 = vpop.xlane.xlu1 %749 }
 0x1b7   :  { %v751_v38 = vadd.f32 %v750_v59, %v701_v51 }
 0x1b9   :  { %752 = vst.msk [vmem:[#allocation4] sm:$0x3] %vm1758_vm0, %v751_v38 }
 0x1bb   :  { %v661_v7 = vpop.xlane.xlu0 %660 }
 0x1bc   :  { %v662_v58 = vadd.f32 %v661_v7, %v627_v0 }
 0x1be   :  { %664 = vst.msk [vmem:[#allocation2] sm:$0x3] %vm1759_vm4, %v662_v58 }
 0x1cc   :  { %v854_v53 = vpop.xlane.xlu2 %853 }
 0x1cd   :  { %v855_v22 = vadd.f32 %v854_v53, %v805_v12 }
 0x1cf   :  { %856 = vst.msk [vmem:[#allocation6] sm:$0x3] %vm1760_vm5, %v855_v22 }
 0x1d9   :  { %v802_v1 = vpop.xlane.xlu1 %801 }
 0x1da   :  { %v803_v40 = vadd.f32 %v802_v1, %v753_v3 }
 0x1dc   :  { %804 = vst.msk [vmem:[#allocation5] sm:$0x3] %vm1761_vm2, %v803_v40 }
 0x1de   :  { %v698_v45 = vpop.xlane.xlu0 %697 }
 0x1df   :  { %v699_v50 = vadd.f32 %v698_v45, %v665_v2 }
 0x1e1   :  { %700 = vst.msk [vmem:[#allocation3] sm:$0x3] %vm1762_vm6, %v699_v50 }
 0x1e2 PF:  { %s860_s28 = scvt.s32.f32 %s1751_s0  ;;  %v861_v9 = vld [vmem:[#allocation2] sm:$0x3]  ;;  %v863_v25 = vld [vmem:[#allocation4] sm:$0x3]  ;;  %v865_v29 = vld [vmem:[#allocation6] sm:$0x3] }
 0x1e3   :  { %v864_v54 = vld [vmem:[#allocation5] sm:$0x3]  ;;  %vm1763_vm4 = vcmask 1024  }
 0x1e4   :  { %v866_v10 = vstv %s860_s28 }
 0x1e5   :  { %952 = vrcp.f32 %v866_v10  ;;  %v878_v15 = vand.u32 2147483648, %v866_v10  ;;  %vm872_vm7 = vweird.f32 %v866_v10  ;;  %v876_v6 = vand.u32 2147483647, %v866_v10 }
 0x1e7   :  { %v879_v30 = vor.u32 1.1754944e-38, %v878_v15  ;;  %vm877_vm10 = vcmp.eq.f32.partialorder %v876_v6, 8.507059e+37 }
 0x1e8   :  { %v862_v34 = vld [vmem:[#allocation3] sm:$0x3] }
 0x1eb   :  { %v953_v5 = vpop.eup %952 }
 0x1ec   :  { %v868_v31 = vmul.f32 %v953_v5, %v866_v10  ;;  %vm873_vm8 = vweird.f32 %v953_v5 }
 0x1ed   :  { %vm874_vm9 = vmor %vm872_vm7, %vm873_vm8 }
 0x1ee   :  { %v869_v46 = vsub.f32 1.0, %v868_v31 }
 0x1f0   :  { %v870_v60 = vmul.f32 %v953_v5, %v869_v46 }
 0x1f2   :  { %v871_v33 = vadd.f32 %v953_v5, %v870_v60 }
 0x1f4   :  { %v875_v26 = vsel %vm874_vm9, %v953_v5, %v871_v33 }
 0x1f5   :  { %v880_v57 = vsel %vm877_vm10, %v879_v30, %v875_v26 }
 0x1f6   :  { %v881_v4 = vmul.f32 %v880_v57, %v861_v9  ;;  %v882_v47 = vmul.f32 %v880_v57, %v862_v34 }
 0x1f8   :  { %v883_v41 = vmul.f32 %v881_v4, %v866_v10  ;;  %v887_v44 = vmul.f32 %v882_v47, %v866_v10 }
 0x1fa   :  { %v884_v24 = vmul.f32 %v883_v41, %v881_v4  ;;  %v891_v62 = vmul.f32 %v883_v41, %v882_v47  ;;  %v888_v42 = vmul.f32 %v887_v44, %v882_v47 }
 0x1fc   :  { %v885_v21 = vsub.f32 %v863_v25, %v884_v24  ;;  %v892_v14 = vsub.f32 %v865_v29, %v891_v62  ;;  %v889_v56 = vsub.f32 %v864_v54, %v888_v42 }
 0x1fe   :  { %v886_v8 = vmax.f32 %v885_v21, 0.0  ;;  %v893_v37 = vadd.f32 1e-08, %v892_v14  ;;  %v890_v19 = vmax.f32 %v889_v56, 0.0 }
 0x200   :  { %v894_v36 = vadd.f32 1e-08, %v886_v8 }
 0x202   :  { %954 = vrcp.f32 %v894_v36  ;;  %v906_v63 = vand.u32 2147483648, %v894_v36  ;;  %vm900_vm11 = vweird.f32 %v894_v36  ;;  %v904_v11 = vand.u32 2147483647, %v894_v36 }
 0x204   :  { %v907_v27 = vor.u32 1.1754944e-38, %v906_v63  ;;  %vm905_vm14 = vcmp.eq.f32.partialorder %v904_v11, 8.507059e+37 }
 0x208   :  { %v955_v28 = vpop.eup %954 }
 0x209   :  { %v896_v13 = vmul.f32 %v955_v28, %v894_v36  ;;  %vm901_vm12 = vweird.f32 %v955_v28 }
 0x20a   :  { %vm902_vm13 = vmor %vm900_vm11, %vm901_vm12 }
 0x20b   :  { %v897_v49 = vsub.f32 1.0, %v896_v13 }
 0x20d   :  { %v898_v16 = vmul.f32 %v955_v28, %v897_v49 }
 0x20f   :  { %v899_v52 = vadd.f32 %v955_v28, %v898_v16 }
 0x211   :  { %v903_v23 = vsel %vm902_vm13, %v955_v28, %v899_v52 }
 0x212   :  { %v908_v61 = vsel %vm905_vm14, %v907_v27, %v903_v23 }
 0x213   :  { %v909_v18 = vmul.f32 %v908_v61, %v893_v37 }
 0x215   :  { %v910_v20 = vmul.f32 %v909_v18, %v909_v18  ;;  %v912_v48 = vmul.f32 2.0, %v909_v18 }
 0x217   :  { %v911_v32 = vmul.f32 %v910_v20, %v886_v8  ;;  %v913_v35 = vmul.f32 %v912_v48, %v892_v14 }
 0x219   :  { %v914_v39 = vsub.f32 %v890_v19, %v913_v35 }
 0x21b   :  { %v915_v43 = vadd.f32 %v914_v39, %v911_v32 }
 0x21d   :  { %v916_v17 = vmax.f32 %v915_v43, 1e-30 }
 0x21f   :  { %956 = vrcp.f32 %v916_v17  ;;  %v928_v59 = vand.u32 2147483648, %v916_v17  ;;  %vm922_vm15 = vweird.f32 %v916_v17  ;;  %v926_v0 = vand.u32 2147483647, %v916_v17 }
 0x221   :  { %v929_v58 = vor.u32 1.1754944e-38, %v928_v59  ;;  %vm927_vm0 = vcmp.eq.f32.partialorder %v926_v0, 8.507059e+37 }
 0x225   :  { %v957_v55 = vpop.eup %956 }
 0x226   :  { %v918_v51 = vmul.f32 %v957_v55, %v916_v17  ;;  %vm923_vm1 = vweird.f32 %v957_v55 }
 0x227   :  { %vm924_vm3 = vmor %vm922_vm15, %vm923_vm1 }
 0x228   :  { %v919_v38 = vsub.f32 1.0, %v918_v51 }
 0x22a   :  { %v920_v7 = vmul.f32 %v957_v55, %v919_v38 }
 0x22c   :  { %v921_v12 = vadd.f32 %v957_v55, %v920_v7 }
 0x22e   :  { %v925_v53 = vsel %vm924_vm3, %v957_v55, %v921_v12 }
 0x22f   :  { %v930_v22 = vsel %vm927_vm0, %v929_v58, %v925_v53 }
 0x230   :  { %v931_v3 = vmul.f32 %v930_v22, %v911_v32 }
 0x232   :  { %v932_v1 = vadd.f32 1e-08, %v931_v3 }
 0x234   :  { %958 = vlog2.f32 %v932_v1 }
 0x23a   :  { %v959_v40 = vpop.eup %958 }
 0x23b   :  { %v934_v2 = vmul.f32 0.6931472, %v959_v40 }
 0x23d   :  { %v935_v45 = vmul.f32 -10.0, %v934_v2 }
 0x23f   :  { %v936_v50 = vmul.f32 0.4342945, %v935_v45 }
 0x241   :  { %938 = vst.msk [vmem:[%s1754_s3] sm:$0x3] %vm1763_vm4, %v936_v50 }
 0x242   :  { %943 = vsyncpa [#allocation10], 1 }
 0x243   :  { %944 = vsyncpa [#allocation12], 1 }

</bundles_post_ra>
